<compile_context>
chip_gen: v5e
topology: v5e:2x2
jax: 0.10.0
libtpu: 0.0.40
codegen_flags: <defaults>
</compile_context>

<pallas_src>
import jax
import jax.numpy as jnp
from jax import lax
from jax.experimental import pallas as pl
from jax.experimental.pallas import tpu as pltpu

# small, shape-consistent config (stands in for hidden=768, chunk_size=512)
HIDDEN = 32               # bert hidden size
INTER = 64                # FFN intermediate size
CHUNK = 8                 # tokens per chunk
SEQ = 4                   # chunks per document
BATCH = 2                 # documents
VOCAB = 64
OUT = 1                   # output_size of the regressor
OUT_PAD = 128             # lane-dense output slab width (result lives in column 0)

DOC_TOKENS = SEQ * CHUNK  # tokens per document processed by one grid step


def _layernorm(x, g, b, eps=1e-5):
    mu = jnp.mean(x, axis=-1, keepdims=True)
    var = jnp.mean((x - mu) ** 2, axis=-1, keepdims=True)
    return (x - mu) * lax.rsqrt(var + eps) * g + b


def _gelu(x):
    # tanh-approx gelu (EUP path)
    return 0.5 * x * (1.0 + jnp.tanh(0.7978845608028654 * (x + 0.044715 * x * x * x)))


def bert_regressor_doc_kernel(x_ref, kmask_ref,
                              w_attn_ref, b_attn_ref, ln1_ref,
                              w1_ref, b1_ref, w2_ref, b2_ref, ln2_ref,
                              aw_ref, ab_ref, rw_ref, rb_ref,
                              out_ref, h2_scratch):
    """One grid step = one document: encoder over its SEQ chunks -> per-chunk CLS ->
    attention pooling -> linear regressor -> sigmoid."""
    x = x_ref[0]                          # (DOC_TOKENS, HIDDEN) token embeddings
    kmask = kmask_ref[0]                  # (SEQ, 1, CHUNK) key-padding mask {0,1}

    # packed projections indexed on the leading axis (free; no lane slicing)
    wq = w_attn_ref[0]
    wk = w_attn_ref[1]
    wv = w_attn_ref[2]
    wo = w_attn_ref[3]

    scale = 1.0 / (HIDDEN ** 0.5)
    # fold 1/sqrt(d) into q: a T x H multiply instead of a T x T score scale
    q = (jnp.dot(x, wq, preferred_element_type=jnp.float32) + b_attn_ref[0:1, :]) * scale
    k = jnp.dot(x, wk, preferred_element_type=jnp.float32) + b_attn_ref[1:2, :]
    v = jnp.dot(x, wv, preferred_element_type=jnp.float32) + b_attn_ref[2:3, :]

    # ---- batched per-chunk attention: (SEQ, CHUNK, CHUNK) scores, no (T, T) ----
    q3 = q.reshape(SEQ, CHUNK, HIDDEN)
    k3 = k.reshape(SEQ, CHUNK, HIDDEN)
    v3 = v.reshape(SEQ, CHUNK, HIDDEN)
    scores = jnp.einsum('bqd,bkd->bqk', q3, k3,
                        preferred_element_type=jnp.float32)      # (SEQ, CHUNK, CHUNK)
    scores = jnp.where(kmask > 0.5, scores, -1e9)                # key-padding mask only

    scores = scores - jnp.max(scores, axis=-1, keepdims=True)
    p = jnp.exp(scores)
    p = p * pl.reciprocal(jnp.sum(p, axis=-1, keepdims=True), approx=True)

    attn = jnp.einsum('bqk,bkd->bqd', p, v3,
                      preferred_element_type=jnp.float32)        # (SEQ, CHUNK, HIDDEN)
    attn = attn.reshape(DOC_TOKENS, HIDDEN)
    attn = jnp.dot(attn, wo, preferred_element_type=jnp.float32) + b_attn_ref[3:4, :]

    h = _layernorm(x + attn, ln1_ref[0:1, :], ln1_ref[1:2, :])

    # ---- FFN for all chunks of this document at once ---------------------------
    f = _gelu(jnp.dot(h, w1_ref[...], preferred_element_type=jnp.float32) + b1_ref[...])
    f = jnp.dot(f, w2_ref[...], preferred_element_type=jnp.float32) + b2_ref[...]
    h2 = _layernorm(h + f, ln2_ref[0:1, :], ln2_ref[1:2, :])     # (DOC_TOKENS, HIDDEN)

    # ---- CLS extraction: strided sublane read (row 0 of every chunk) -----------
    h2_scratch[...] = h2
    cls = h2_scratch[pl.ds(0, SEQ, stride=CHUNK), :]             # (SEQ, HIDDEN)

    # ---- AttentionPooling over the SEQ chunks of this document -----------------
    # NOTE: like the reference PyTorch module, no chunk-level mask is applied here.
    s = jnp.dot(cls, aw_ref[...], preferred_element_type=jnp.float32) + ab_ref[...]  # (SEQ, 1)
    s = s - jnp.max(s, axis=0, keepdims=True)
    e = jnp.exp(s)
    w = e / jnp.sum(e, axis=0, keepdims=True)                    # exact softmax weights
    pooled = jnp.sum(cls * w, axis=0, keepdims=True)             # (1, HIDDEN)

    # ---- regressor + exact sigmoid, lane-dense output slab ---------------------
    y = jnp.dot(pooled, rw_ref[...], preferred_element_type=jnp.float32) + rb_ref[...]  # (1, OUT_PAD)
    sig = 1.0 / (1.0 + jnp.exp(-y))                              # exact sigmoid (parity)
    out_ref[0] = jnp.broadcast_to(sig, (8, OUT_PAD))


def _resident(shape):
    """Whole-array BlockSpec whose block index is constant along the grid
    -> Pallas keeps the weight resident in VMEM instead of re-DMAing per step."""
    zeros = (0,) * len(shape)
    return pl.BlockSpec(shape, lambda b, _z=zeros: _z)


_PARAM_ORDER = ["w_attn", "b_attn", "ln1", "w1", "b1", "w2", "b2", "ln2",
                "attn_w", "attn_b"]


def bert_regressor_forward(params, input_ids, attention_mask):
    B, S, C = input_ids.shape
    assert (B, S, C) == (BATCH, SEQ, CHUNK)

    # TODO(synk): at real scale move this gather into the kernel
    # (PrefetchScalarGridSpec scalar-prefetched ids + pl.Element row-gather on word_emb)
    # to avoid writing/re-reading the (TOKENS, HIDDEN) activation through HBM.
    ids_flat = input_ids.reshape(-1)
    emb = jnp.take(params["word_emb"], ids_flat, axis=0).astype(jnp.float32)
    emb = emb.reshape(BATCH, DOC_TOKENS, HIDDEN)

    kmask = attention_mask.astype(jnp.float32).reshape(BATCH, SEQ, 1, CHUNK)

    # pad the regressor to a lane-dense 128-wide slab (result in column 0)
    rw_pad = jnp.zeros((HIDDEN, OUT_PAD), jnp.float32).at[:, :OUT].set(params["reg_w"])
    rb_pad = jnp.zeros((1, OUT_PAD), jnp.float32).at[:, :OUT].set(params["reg_b"])

    weight_args = [params[n] for n in _PARAM_ORDER] + [rw_pad, rb_pad]

    in_specs = (
        [pl.BlockSpec((1, DOC_TOKENS, HIDDEN), lambda b: (b, 0, 0)),    # per-doc tokens
         pl.BlockSpec((1, SEQ, 1, CHUNK), lambda b: (b, 0, 0, 0))]      # per-doc mask
        + [_resident(w.shape) for w in weight_args]                     # resident weights
    )

    out = pl.pallas_call(
        bert_regressor_doc_kernel,
        out_shape=jax.ShapeDtypeStruct((BATCH, 8, OUT_PAD), jnp.float32),
        grid=(BATCH,),                                   # one document per grid step
        in_specs=in_specs,
        out_specs=pl.BlockSpec((1, 8, OUT_PAD), lambda b: (b, 0, 0)),
        scratch_shapes=[pltpu.VMEM((DOC_TOKENS, HIDDEN), jnp.float32)],
        compiler_params=pltpu.CompilerParams(
            dimension_semantics=("parallel",),           # documents shard across TCs on v7x
            vmem_limit_bytes=48 * 1024 * 1024),          # explicit budget (<= v7x 64 MiB)
    )(emb, kmask, *weight_args)

    return out[:, 0, :OUT]                               # (BATCH, OUT)


def init_params(key):
    ks = jax.random.split(key, 8)
    n = lambda k, shape, s=0.05: jax.random.normal(k, shape, jnp.float32) * s
    ln_pack = jnp.concatenate([jnp.ones((1, HIDDEN), jnp.float32),
                               jnp.zeros((1, HIDDEN), jnp.float32)], axis=0)  # [gamma; beta]
    return {
        # synthetic encoder (stand-in for the pretrained RobertaModel)
        "word_emb": n(ks[0], (VOCAB, HIDDEN), 0.1),
        "w_attn": n(ks[1], (4, HIDDEN, HIDDEN)),        # packed [wq, wk, wv, wo]
        "b_attn": jnp.zeros((4, HIDDEN), jnp.float32),  # packed [bq, bk, bv, bo]
        "ln1": ln_pack,
        "w1": n(ks[2], (HIDDEN, INTER)),
        "b1": jnp.zeros((1, INTER), jnp.float32),
        "w2": n(ks[3], (INTER, HIDDEN)),
        "b2": jnp.zeros((1, HIDDEN), jnp.float32),
        "ln2": ln_pack,
        # AttentionPooling: nn.Linear(hidden, 1)
        "attn_w": n(ks[4], (HIDDEN, 1), 0.1),
        "attn_b": jnp.zeros((1, 1), jnp.float32),
        # regressor: nn.Linear(hidden, output_size)
        "reg_w": n(ks[5], (HIDDEN, OUT), 0.1),
        "reg_b": jnp.zeros((1, OUT), jnp.float32),
    }


if __name__ == "__main__":
    key = jax.random.PRNGKey(0)
    k_param, k_ids = jax.random.split(key)

    params = init_params(k_param)

    input_ids = jax.random.randint(k_ids, (BATCH, SEQ, CHUNK), 0, VOCAB, dtype=jnp.int32)
    # mask the last 2 tokens of every chunk as padding (CLS / position 0 never padded)
    tok_pos = jnp.arange(CHUNK)[None, None, :]
    attention_mask = jnp.broadcast_to((tok_pos < (CHUNK - 2)).astype(jnp.int32),
                                      (BATCH, SEQ, CHUNK))

    # TODO(synk): pretrained `neulab/codebert-cpp` weights are not loadable here;
    # the encoder is a deterministic synthetic 1-layer stand-in with the same interface.
    out = bert_regressor_forward(params, input_ids, attention_mask)
    out = jax.block_until_ready(out)
    assert out.shape == (BATCH, OUT)
    assert bool(jnp.all((out > 0.0) & (out < 1.0)))
    print("KERNEL_OK")
</pallas_src>

<mosaic_0001>
module attributes {stable_mosaic.version = 11 : i64} {
  func.func @bert_regressor_doc_kernel(%arg0: i32, %arg1: memref<1x32x32xf32, #tpu.memory_space<vmem>>, %arg2: memref<1x4x1x8xf32, #tpu.memory_space<vmem>>, %arg3: memref<4x32x32xf32, #tpu.memory_space<vmem>>, %arg4: memref<4x32xf32, #tpu.memory_space<vmem>>, %arg5: memref<2x32xf32, #tpu.memory_space<vmem>>, %arg6: memref<32x64xf32, #tpu.memory_space<vmem>>, %arg7: memref<1x64xf32, #tpu.memory_space<vmem>>, %arg8: memref<64x32xf32, #tpu.memory_space<vmem>>, %arg9: memref<1x32xf32, #tpu.memory_space<vmem>>, %arg10: memref<2x32xf32, #tpu.memory_space<vmem>>, %arg11: memref<32x1xf32, #tpu.memory_space<vmem>>, %arg12: memref<1x1xf32, #tpu.memory_space<vmem>>, %arg13: memref<32x128xf32, #tpu.memory_space<vmem>>, %arg14: memref<1x128xf32, #tpu.memory_space<vmem>>, %arg15: memref<1x8x128xf32, #tpu.memory_space<vmem>>, %arg16: memref<32x32xf32, #tpu.memory_space<vmem>>) attributes {dimension_semantics = [#tpu.dimension_semantics<parallel>], iteration_bounds = array<i64: 2>, scalar_prefetch = 0 : i64, scratch_operands = 1 : i64, tpu.core_type = #tpu.core_type<tc>, window_params = [{transform_indices = @transform_0, window_bounds = array<i64: 1, 32, 32>}, {transform_indices = @transform_1, window_bounds = array<i64: 1, 4, 1, 8>}, {pipeline_mode = #tpu.pipeline_mode<synchronous>, transform_indices = @transform_2, window_bounds = array<i64: 4, 32, 32>}, {pipeline_mode = #tpu.pipeline_mode<synchronous>, transform_indices = @transform_3, window_bounds = array<i64: 4, 32>}, {pipeline_mode = #tpu.pipeline_mode<synchronous>, transform_indices = @transform_4, window_bounds = array<i64: 2, 32>}, {pipeline_mode = #tpu.pipeline_mode<synchronous>, transform_indices = @transform_5, window_bounds = array<i64: 32, 64>}, {pipeline_mode = #tpu.pipeline_mode<synchronous>, transform_indices = @transform_6, window_bounds = array<i64: 1, 64>}, {pipeline_mode = #tpu.pipeline_mode<synchronous>, transform_indices = @transform_7, window_bounds = array<i64: 64, 32>}, {pipeline_mode = #tpu.pipeline_mode<synchronous>, transform_indices = @transform_8, window_bounds = array<i64: 1, 32>}, {pipeline_mode = #tpu.pipeline_mode<synchronous>, transform_indices = @transform_9, window_bounds = array<i64: 2, 32>}, {pipeline_mode = #tpu.pipeline_mode<synchronous>, transform_indices = @transform_10, window_bounds = array<i64: 32, 1>}, {pipeline_mode = #tpu.pipeline_mode<synchronous>, transform_indices = @transform_11, window_bounds = array<i64: 1, 1>}, {pipeline_mode = #tpu.pipeline_mode<synchronous>, transform_indices = @transform_12, window_bounds = array<i64: 32, 128>}, {pipeline_mode = #tpu.pipeline_mode<synchronous>, transform_indices = @transform_13, window_bounds = array<i64: 1, 128>}, {transform_indices = @transform_14, window_bounds = array<i64: 1, 8, 128>}]} {
    %c0 = arith.constant 0 : index
    %c0_0 = arith.constant 0 : index
    %c0_1 = arith.constant 0 : index
    %0 = vector.load %arg1[%c0, %c0_0, %c0_1] : memref<1x32x32xf32, #tpu.memory_space<vmem>>, vector<1x32x32xf32>
    %1 = vector.shape_cast %0 : vector<1x32x32xf32> to vector<32x32xf32>
    %c0_2 = arith.constant 0 : index
    %c0_3 = arith.constant 0 : index
    %c0_4 = arith.constant 0 : index
    %c0_5 = arith.constant 0 : index
    %2 = vector.load %arg2[%c0_2, %c0_3, %c0_4, %c0_5] : memref<1x4x1x8xf32, #tpu.memory_space<vmem>>, vector<1x4x1x8xf32>
    %3 = vector.shape_cast %2 : vector<1x4x1x8xf32> to vector<4x1x8xf32>
    %c0_6 = arith.constant 0 : index
    %c0_7 = arith.constant 0 : index
    %c0_8 = arith.constant 0 : index
    %4 = vector.load %arg3[%c0_6, %c0_7, %c0_8] : memref<4x32x32xf32, #tpu.memory_space<vmem>>, vector<1x32x32xf32>
    %5 = vector.shape_cast %4 : vector<1x32x32xf32> to vector<32x32xf32>
    %c1 = arith.constant 1 : index
    %c0_9 = arith.constant 0 : index
    %c0_10 = arith.constant 0 : index
    %6 = vector.load %arg3[%c1, %c0_9, %c0_10] : memref<4x32x32xf32, #tpu.memory_space<vmem>>, vector<1x32x32xf32>
    %7 = vector.shape_cast %6 : vector<1x32x32xf32> to vector<32x32xf32>
    %c2 = arith.constant 2 : index
    %c0_11 = arith.constant 0 : index
    %c0_12 = arith.constant 0 : index
    %8 = vector.load %arg3[%c2, %c0_11, %c0_12] : memref<4x32x32xf32, #tpu.memory_space<vmem>>, vector<1x32x32xf32>
    %9 = vector.shape_cast %8 : vector<1x32x32xf32> to vector<32x32xf32>
    %c3 = arith.constant 3 : index
    %c0_13 = arith.constant 0 : index
    %c0_14 = arith.constant 0 : index
    %10 = vector.load %arg3[%c3, %c0_13, %c0_14] : memref<4x32x32xf32, #tpu.memory_space<vmem>>, vector<1x32x32xf32>
    %11 = vector.shape_cast %10 : vector<1x32x32xf32> to vector<32x32xf32>
    %cst = arith.constant dense<0.000000e+00> : vector<32x32xf32>
    %12 = tpu.matmul %1, %5, %cst {dimension_numbers = #tpu.dot_dimension_numbers<[1], [0], [0], [1], [0, 0, 1, 1], [], []>} : vector<32x32xf32>, vector<32x32xf32>, vector<32x32xf32> -> vector<32x32xf32>
    %c0_15 = arith.constant 0 : index
    %c0_16 = arith.constant 0 : index
    %13 = vector.load %arg4[%c0_15, %c0_16] : memref<4x32xf32, #tpu.memory_space<vmem>>, vector<1x32xf32>
    %14 = vector.broadcast %13 : vector<1x32xf32> to vector<32x32xf32>
    %15 = arith.addf %12, %14 : vector<32x32xf32>
    %cst_17 = arith.constant 0.176776692 : f32
    %16 = vector.broadcast %cst_17 : f32 to vector<32x32xf32>
    %17 = arith.mulf %15, %16 : vector<32x32xf32>
    %cst_18 = arith.constant dense<0.000000e+00> : vector<32x32xf32>
    %18 = tpu.matmul %1, %7, %cst_18 {dimension_numbers = #tpu.dot_dimension_numbers<[1], [0], [0], [1], [0, 0, 1, 1], [], []>} : vector<32x32xf32>, vector<32x32xf32>, vector<32x32xf32> -> vector<32x32xf32>
    %c1_19 = arith.constant 1 : index
    %c0_20 = arith.constant 0 : index
    %19 = vector.load %arg4[%c1_19, %c0_20] : memref<4x32xf32, #tpu.memory_space<vmem>>, vector<1x32xf32>
    %20 = vector.broadcast %19 : vector<1x32xf32> to vector<32x32xf32>
    %21 = arith.addf %18, %20 : vector<32x32xf32>
    %cst_21 = arith.constant dense<0.000000e+00> : vector<32x32xf32>
    %22 = tpu.matmul %1, %9, %cst_21 {dimension_numbers = #tpu.dot_dimension_numbers<[1], [0], [0], [1], [0, 0, 1, 1], [], []>} : vector<32x32xf32>, vector<32x32xf32>, vector<32x32xf32> -> vector<32x32xf32>
    %c2_22 = arith.constant 2 : index
    %c0_23 = arith.constant 0 : index
    %23 = vector.load %arg4[%c2_22, %c0_23] : memref<4x32xf32, #tpu.memory_space<vmem>>, vector<1x32xf32>
    %24 = vector.broadcast %23 : vector<1x32xf32> to vector<32x32xf32>
    %25 = arith.addf %22, %24 : vector<32x32xf32>
    %26 = vector.shape_cast %17 : vector<32x32xf32> to vector<4x8x32xf32>
    %27 = vector.shape_cast %21 : vector<32x32xf32> to vector<4x8x32xf32>
    %28 = vector.shape_cast %25 : vector<32x32xf32> to vector<4x8x32xf32>
    "tpu.trace_start"() <{level = 10 : i32, message = "bqd,bkd->bqk"}> : () -> ()
    %cst_24 = arith.constant dense<0.000000e+00> : vector<4x8x8xf32>
    %29 = tpu.matmul %26, %27, %cst_24 {dimension_numbers = #tpu.dot_dimension_numbers<[2], [2], [1], [1], [0, 0, 0, 1, 1, 1], [0], [0]>} : vector<4x8x32xf32>, vector<4x8x32xf32>, vector<4x8x8xf32> -> vector<4x8x8xf32>
    %cst_25 = arith.constant 5.000000e-01 : f32
    "tpu.trace_stop"() : () -> ()
    %30 = vector.broadcast %cst_25 : f32 to vector<4x1x8xf32>
    %31 = arith.cmpf ogt, %3, %30 : vector<4x1x8xf32>
    %cst_26 = arith.constant -1.000000e+09 : f32
    %32 = vector.shape_cast %31 : vector<4x1x8xi1> to vector<4x1x8xi1>
    %33 = vector.broadcast %32 : vector<4x1x8xi1> to vector<4x8x8xi1>
    %34 = vector.broadcast %cst_26 : f32 to vector<4x8x8xf32>
    %35 = arith.select %33, %29, %34 : vector<4x8x8xi1>, vector<4x8x8xf32>
    %cst_27 = arith.constant dense<0xFF800000> : vector<4x8xf32>
    %36 = vector.multi_reduction <maximumf>, %35, %cst_27 [2] : vector<4x8x8xf32> to vector<4x8xf32>
    %37 = vector.shape_cast %36 : vector<4x8xf32> to vector<4x8x1xf32>
    %38 = vector.broadcast %37 : vector<4x8x1xf32> to vector<4x8x8xf32>
    %39 = arith.subf %35, %38 : vector<4x8x8xf32>
    %40 = math.exp %39 : vector<4x8x8xf32>
    %cst_28 = arith.constant dense<0.000000e+00> : vector<4x8xf32>
    %41 = vector.multi_reduction <add>, %40, %cst_28 [2] : vector<4x8x8xf32> to vector<4x8xf32>
    %42 = vector.shape_cast %41 : vector<4x8xf32> to vector<4x8x1xf32>
    %43 = tpu.reciprocal %42 {approx = true} : vector<4x8x1xf32> -> vector<4x8x1xf32>
    %44 = vector.broadcast %43 : vector<4x8x1xf32> to vector<4x8x8xf32>
    %45 = arith.mulf %40, %44 : vector<4x8x8xf32>
    "tpu.trace_start"() <{level = 10 : i32, message = "bqk,bkd->bqd"}> : () -> ()
    %cst_29 = arith.constant dense<0.000000e+00> : vector<4x8x32xf32>
    %46 = tpu.matmul %45, %28, %cst_29 {dimension_numbers = #tpu.dot_dimension_numbers<[2], [1], [1], [2], [0, 0, 0, 1, 1, 2], [0], [0]>} : vector<4x8x8xf32>, vector<4x8x32xf32>, vector<4x8x32xf32> -> vector<4x8x32xf32>
    "tpu.trace_stop"() : () -> ()
    %47 = vector.shape_cast %46 : vector<4x8x32xf32> to vector<32x32xf32>
    %cst_30 = arith.constant dense<0.000000e+00> : vector<32x32xf32>
    %48 = tpu.matmul %47, %11, %cst_30 {dimension_numbers = #tpu.dot_dimension_numbers<[1], [0], [0], [1], [0, 0, 1, 1], [], []>} : vector<32x32xf32>, vector<32x32xf32>, vector<32x32xf32> -> vector<32x32xf32>
    %c3_31 = arith.constant 3 : index
    %c0_32 = arith.constant 0 : index
    %49 = vector.load %arg4[%c3_31, %c0_32] : memref<4x32xf32, #tpu.memory_space<vmem>>, vector<1x32xf32>
    %50 = vector.broadcast %49 : vector<1x32xf32> to vector<32x32xf32>
    %51 = arith.addf %48, %50 : vector<32x32xf32>
    %52 = arith.addf %1, %51 : vector<32x32xf32>
    %c0_33 = arith.constant 0 : index
    %c0_34 = arith.constant 0 : index
    %53 = vector.load %arg5[%c0_33, %c0_34] : memref<2x32xf32, #tpu.memory_space<vmem>>, vector<1x32xf32>
    %c1_35 = arith.constant 1 : index
    %c0_36 = arith.constant 0 : index
    %54 = vector.load %arg5[%c1_35, %c0_36] : memref<2x32xf32, #tpu.memory_space<vmem>>, vector<1x32xf32>
    %cst_37 = arith.constant dense<0.000000e+00> : vector<32xf32>
    %55 = vector.multi_reduction <add>, %52, %cst_37 [1] : vector<32x32xf32> to vector<32xf32>
    %56 = vector.shape_cast %55 : vector<32xf32> to vector<32x1xf32>
    %cst_38 = arith.constant 3.200000e+01 : f32
    %57 = vector.broadcast %cst_38 : f32 to vector<32x1xf32>
    %58 = arith.divf %56, %57 : vector<32x1xf32>
    %59 = vector.broadcast %58 : vector<32x1xf32> to vector<32x32xf32>
    %60 = arith.subf %52, %59 : vector<32x32xf32>
    %61 = arith.mulf %60, %60 : vector<32x32xf32>
    %cst_39 = arith.constant dense<0.000000e+00> : vector<32xf32>
    %62 = vector.multi_reduction <add>, %61, %cst_39 [1] : vector<32x32xf32> to vector<32xf32>
    %63 = vector.shape_cast %62 : vector<32xf32> to vector<32x1xf32>
    %cst_40 = arith.constant 3.200000e+01 : f32
    %64 = vector.broadcast %cst_40 : f32 to vector<32x1xf32>
    %65 = arith.divf %63, %64 : vector<32x1xf32>
    %66 = vector.broadcast %58 : vector<32x1xf32> to vector<32x32xf32>
    %67 = arith.subf %52, %66 : vector<32x32xf32>
    %cst_41 = arith.constant 9.99999974E-6 : f32
    %68 = vector.broadcast %cst_41 : f32 to vector<32x1xf32>
    %69 = arith.addf %65, %68 : vector<32x1xf32>
    %70 = math.rsqrt %69 : vector<32x1xf32>
    %71 = vector.broadcast %70 : vector<32x1xf32> to vector<32x32xf32>
    %72 = arith.mulf %67, %71 : vector<32x32xf32>
    %73 = vector.broadcast %53 : vector<1x32xf32> to vector<32x32xf32>
    %74 = arith.mulf %72, %73 : vector<32x32xf32>
    %75 = vector.broadcast %54 : vector<1x32xf32> to vector<32x32xf32>
    %76 = arith.addf %74, %75 : vector<32x32xf32>
    %c0_42 = arith.constant 0 : index
    %c0_43 = arith.constant 0 : index
    %77 = vector.load %arg6[%c0_42, %c0_43] : memref<32x64xf32, #tpu.memory_space<vmem>>, vector<32x64xf32>
    %cst_44 = arith.constant dense<0.000000e+00> : vector<32x64xf32>
    %78 = tpu.matmul %76, %77, %cst_44 {dimension_numbers = #tpu.dot_dimension_numbers<[1], [0], [0], [1], [0, 0, 1, 1], [], []>} : vector<32x32xf32>, vector<32x64xf32>, vector<32x64xf32> -> vector<32x64xf32>
    %c0_45 = arith.constant 0 : index
    %c0_46 = arith.constant 0 : index
    %79 = vector.load %arg7[%c0_45, %c0_46] : memref<1x64xf32, #tpu.memory_space<vmem>>, vector<1x64xf32>
    %80 = vector.broadcast %79 : vector<1x64xf32> to vector<32x64xf32>
    %81 = arith.addf %78, %80 : vector<32x64xf32>
    %cst_47 = arith.constant 5.000000e-01 : f32
    %82 = vector.broadcast %cst_47 : f32 to vector<32x64xf32>
    %83 = arith.mulf %82, %81 : vector<32x64xf32>
    %cst_48 = arith.constant 4.471500e-02 : f32
    %84 = vector.broadcast %cst_48 : f32 to vector<32x64xf32>
    %85 = arith.mulf %84, %81 : vector<32x64xf32>
    %86 = arith.mulf %85, %81 : vector<32x64xf32>
    %87 = arith.mulf %86, %81 : vector<32x64xf32>
    %88 = arith.addf %81, %87 : vector<32x64xf32>
    %cst_49 = arith.constant 0.797884583 : f32
    %89 = vector.broadcast %cst_49 : f32 to vector<32x64xf32>
    %90 = arith.mulf %89, %88 : vector<32x64xf32>
    %91 = math.tanh %90 : vector<32x64xf32>
    %cst_50 = arith.constant 1.000000e+00 : f32
    %92 = vector.broadcast %cst_50 : f32 to vector<32x64xf32>
    %93 = arith.addf %92, %91 : vector<32x64xf32>
    %94 = arith.mulf %83, %93 : vector<32x64xf32>
    %c0_51 = arith.constant 0 : index
    %c0_52 = arith.constant 0 : index
    %95 = vector.load %arg8[%c0_51, %c0_52] : memref<64x32xf32, #tpu.memory_space<vmem>>, vector<64x32xf32>
    %cst_53 = arith.constant dense<0.000000e+00> : vector<32x32xf32>
    %96 = tpu.matmul %94, %95, %cst_53 {dimension_numbers = #tpu.dot_dimension_numbers<[1], [0], [0], [1], [0, 0, 1, 1], [], []>} : vector<32x64xf32>, vector<64x32xf32>, vector<32x32xf32> -> vector<32x32xf32>
    %c0_54 = arith.constant 0 : index
    %c0_55 = arith.constant 0 : index
    %97 = vector.load %arg9[%c0_54, %c0_55] : memref<1x32xf32, #tpu.memory_space<vmem>>, vector<1x32xf32>
    %98 = vector.broadcast %97 : vector<1x32xf32> to vector<32x32xf32>
    %99 = arith.addf %96, %98 : vector<32x32xf32>
    %100 = arith.addf %76, %99 : vector<32x32xf32>
    %c0_56 = arith.constant 0 : index
    %c0_57 = arith.constant 0 : index
    %101 = vector.load %arg10[%c0_56, %c0_57] : memref<2x32xf32, #tpu.memory_space<vmem>>, vector<1x32xf32>
    %c1_58 = arith.constant 1 : index
    %c0_59 = arith.constant 0 : index
    %102 = vector.load %arg10[%c1_58, %c0_59] : memref<2x32xf32, #tpu.memory_space<vmem>>, vector<1x32xf32>
    %cst_60 = arith.constant dense<0.000000e+00> : vector<32xf32>
    %103 = vector.multi_reduction <add>, %100, %cst_60 [1] : vector<32x32xf32> to vector<32xf32>
    %104 = vector.shape_cast %103 : vector<32xf32> to vector<32x1xf32>
    %cst_61 = arith.constant 3.200000e+01 : f32
    %105 = vector.broadcast %cst_61 : f32 to vector<32x1xf32>
    %106 = arith.divf %104, %105 : vector<32x1xf32>
    %107 = vector.broadcast %106 : vector<32x1xf32> to vector<32x32xf32>
    %108 = arith.subf %100, %107 : vector<32x32xf32>
    %109 = arith.mulf %108, %108 : vector<32x32xf32>
    %cst_62 = arith.constant dense<0.000000e+00> : vector<32xf32>
    %110 = vector.multi_reduction <add>, %109, %cst_62 [1] : vector<32x32xf32> to vector<32xf32>
    %111 = vector.shape_cast %110 : vector<32xf32> to vector<32x1xf32>
    %cst_63 = arith.constant 3.200000e+01 : f32
    %112 = vector.broadcast %cst_63 : f32 to vector<32x1xf32>
    %113 = arith.divf %111, %112 : vector<32x1xf32>
    %114 = vector.broadcast %106 : vector<32x1xf32> to vector<32x32xf32>
    %115 = arith.subf %100, %114 : vector<32x32xf32>
    %cst_64 = arith.constant 9.99999974E-6 : f32
    %116 = vector.broadcast %cst_64 : f32 to vector<32x1xf32>
    %117 = arith.addf %113, %116 : vector<32x1xf32>
    %118 = math.rsqrt %117 : vector<32x1xf32>
    %119 = vector.broadcast %118 : vector<32x1xf32> to vector<32x32xf32>
    %120 = arith.mulf %115, %119 : vector<32x32xf32>
    %121 = vector.broadcast %101 : vector<1x32xf32> to vector<32x32xf32>
    %122 = arith.mulf %120, %121 : vector<32x32xf32>
    %123 = vector.broadcast %102 : vector<1x32xf32> to vector<32x32xf32>
    %124 = arith.addf %122, %123 : vector<32x32xf32>
    %c0_65 = arith.constant 0 : index
    %c0_66 = arith.constant 0 : index
    %125 = vector.load %arg16[%c0_65, %c0_66] : memref<32x32xf32, #tpu.memory_space<vmem>>, vector<32x32xf32>
    tpu.vector_store %arg16[%c0_65, %c0_66], %124 {strides = array<i32>} : memref<32x32xf32, #tpu.memory_space<vmem>>, vector<32x32xf32>,
    %c0_67 = arith.constant 0 : index
    %c0_68 = arith.constant 0 : index
    %126 = tpu.strided_load %arg16[%c0_67, %c0_68] {strides = array<i32: 8, 1>} : memref<32x32xf32, #tpu.memory_space<vmem>>, vector<4x32xf32>
    %c0_69 = arith.constant 0 : index
    %c0_70 = arith.constant 0 : index
    %127 = vector.load %arg11[%c0_69, %c0_70] : memref<32x1xf32, #tpu.memory_space<vmem>>, vector<32x1xf32>
    %cst_71 = arith.constant dense<0.000000e+00> : vector<4x1xf32>
    %128 = tpu.matmul %126, %127, %cst_71 {dimension_numbers = #tpu.dot_dimension_numbers<[1], [0], [0], [1], [0, 0, 1, 1], [], []>} : vector<4x32xf32>, vector<32x1xf32>, vector<4x1xf32> -> vector<4x1xf32>
    %c0_72 = arith.constant 0 : index
    %c0_73 = arith.constant 0 : index
    %129 = vector.load %arg12[%c0_72, %c0_73] : memref<1x1xf32, #tpu.memory_space<vmem>>, vector<1x1xf32>
    %130 = vector.broadcast %129 : vector<1x1xf32> to vector<4x1xf32>
    %131 = arith.addf %128, %130 : vector<4x1xf32>
    %cst_74 = arith.constant dense<0xFF800000> : vector<1xf32>
    %132 = vector.multi_reduction <maximumf>, %131, %cst_74 [0] : vector<4x1xf32> to vector<1xf32>
    %133 = vector.shape_cast %132 : vector<1xf32> to vector<1x1xf32>
    %134 = vector.broadcast %133 : vector<1x1xf32> to vector<4x1xf32>
    %135 = arith.subf %131, %134 : vector<4x1xf32>
    %136 = math.exp %135 : vector<4x1xf32>
    %cst_75 = arith.constant dense<0.000000e+00> : vector<1xf32>
    %137 = vector.multi_reduction <add>, %136, %cst_75 [0] : vector<4x1xf32> to vector<1xf32>
    %138 = vector.shape_cast %137 : vector<1xf32> to vector<1x1xf32>
    %139 = vector.broadcast %138 : vector<1x1xf32> to vector<4x1xf32>
    %140 = arith.divf %136, %139 : vector<4x1xf32>
    %141 = vector.broadcast %140 : vector<4x1xf32> to vector<4x32xf32>
    %142 = arith.mulf %126, %141 : vector<4x32xf32>
    %cst_76 = arith.constant dense<0.000000e+00> : vector<32xf32>
    %143 = vector.multi_reduction <add>, %142, %cst_76 [0] : vector<4x32xf32> to vector<32xf32>
    %144 = vector.shape_cast %143 : vector<32xf32> to vector<1x32xf32>
    %c0_77 = arith.constant 0 : index
    %c0_78 = arith.constant 0 : index
    %145 = vector.load %arg13[%c0_77, %c0_78] : memref<32x128xf32, #tpu.memory_space<vmem>>, vector<32x128xf32>
    %cst_79 = arith.constant dense<0.000000e+00> : vector<1x128xf32>
    %146 = tpu.matmul %144, %145, %cst_79 {dimension_numbers = #tpu.dot_dimension_numbers<[1], [0], [0], [1], [0, 0, 1, 1], [], []>} : vector<1x32xf32>, vector<32x128xf32>, vector<1x128xf32> -> vector<1x128xf32>
    %c0_80 = arith.constant 0 : index
    %c0_81 = arith.constant 0 : index
    %147 = vector.load %arg14[%c0_80, %c0_81] : memref<1x128xf32, #tpu.memory_space<vmem>>, vector<1x128xf32>
    %148 = arith.addf %146, %147 : vector<1x128xf32>
    %cst_82 = arith.constant 0.000000e+00 : f32
    %149 = vector.broadcast %cst_82 : f32 to vector<1x128xf32>
    %150 = arith.subf %149, %148 : vector<1x128xf32>
    %151 = math.exp %150 : vector<1x128xf32>
    %cst_83 = arith.constant 1.000000e+00 : f32
    %152 = vector.broadcast %cst_83 : f32 to vector<1x128xf32>
    %153 = arith.addf %152, %151 : vector<1x128xf32>
    %cst_84 = arith.constant 1.000000e+00 : f32
    %154 = vector.broadcast %cst_84 : f32 to vector<1x128xf32>
    %155 = arith.divf %154, %153 : vector<1x128xf32>
    %156 = vector.shape_cast %155 : vector<1x128xf32> to vector<1x128xf32>
    %157 = vector.broadcast %156 : vector<1x128xf32> to vector<8x128xf32>
    %c0_85 = arith.constant 0 : index
    %c0_86 = arith.constant 0 : index
    %c0_87 = arith.constant 0 : index
    %158 = vector.load %arg15[%c0_85, %c0_86, %c0_87] : memref<1x8x128xf32, #tpu.memory_space<vmem>>, vector<1x8x128xf32>
    %159 = vector.shape_cast %158 : vector<1x8x128xf32> to vector<8x128xf32>
    %160 = vector.shape_cast %157 : vector<8x128xf32> to vector<1x8x128xf32>
    tpu.vector_store %arg15[%c0_85, %c0_86, %c0_87], %160 {strides = array<i32>} : memref<1x8x128xf32, #tpu.memory_space<vmem>>, vector<1x8x128xf32>,
    return
  }
  func.func @transform_0(%arg0: i32) -> (i32, i32, i32) {
    %c0_i32 = arith.constant 0 : i32
    %c0_i32_0 = arith.constant 0 : i32
    %c0_i32_1 = arith.constant 0 : i32
    return %arg0, %c0_i32, %c0_i32_0 : i32, i32, i32
  }
  func.func @transform_1(%arg0: i32) -> (i32, i32, i32, i32) {
    %c0_i32 = arith.constant 0 : i32
    %c0_i32_0 = arith.constant 0 : i32
    %c0_i32_1 = arith.constant 0 : i32
    %c0_i32_2 = arith.constant 0 : i32
    return %arg0, %c0_i32, %c0_i32_0, %c0_i32_1 : i32, i32, i32, i32
  }
  func.func @transform_2(%arg0: i32) -> (i32, i32, i32) {
    %c0_i32 = arith.constant 0 : i32
    %c0_i32_0 = arith.constant 0 : i32
    %c0_i32_1 = arith.constant 0 : i32
    %c0_i32_2 = arith.constant 0 : i32
    return %c0_i32, %c0_i32_0, %c0_i32_1 : i32, i32, i32
  }
  func.func @transform_3(%arg0: i32) -> (i32, i32) {
    %c0_i32 = arith.constant 0 : i32
    %c0_i32_0 = arith.constant 0 : i32
    %c0_i32_1 = arith.constant 0 : i32
    return %c0_i32, %c0_i32_0 : i32, i32
  }
  func.func @transform_4(%arg0: i32) -> (i32, i32) {
    %c0_i32 = arith.constant 0 : i32
    %c0_i32_0 = arith.constant 0 : i32
    %c0_i32_1 = arith.constant 0 : i32
    return %c0_i32, %c0_i32_0 : i32, i32
  }
  func.func @transform_5(%arg0: i32) -> (i32, i32) {
    %c0_i32 = arith.constant 0 : i32
    %c0_i32_0 = arith.constant 0 : i32
    %c0_i32_1 = arith.constant 0 : i32
    return %c0_i32, %c0_i32_0 : i32, i32
  }
  func.func @transform_6(%arg0: i32) -> (i32, i32) {
    %c0_i32 = arith.constant 0 : i32
    %c0_i32_0 = arith.constant 0 : i32
    %c0_i32_1 = arith.constant 0 : i32
    return %c0_i32, %c0_i32_0 : i32, i32
  }
  func.func @transform_7(%arg0: i32) -> (i32, i32) {
    %c0_i32 = arith.constant 0 : i32
    %c0_i32_0 = arith.constant 0 : i32
    %c0_i32_1 = arith.constant 0 : i32
    return %c0_i32, %c0_i32_0 : i32, i32
  }
  func.func @transform_8(%arg0: i32) -> (i32, i32) {
    %c0_i32 = arith.constant 0 : i32
    %c0_i32_0 = arith.constant 0 : i32
    %c0_i32_1 = arith.constant 0 : i32
    return %c0_i32, %c0_i32_0 : i32, i32
  }
  func.func @transform_9(%arg0: i32) -> (i32, i32) {
    %c0_i32 = arith.constant 0 : i32
    %c0_i32_0 = arith.constant 0 : i32
    %c0_i32_1 = arith.constant 0 : i32
    return %c0_i32, %c0_i32_0 : i32, i32
  }
  func.func @transform_10(%arg0: i32) -> (i32, i32) {
    %c0_i32 = arith.constant 0 : i32
    %c0_i32_0 = arith.constant 0 : i32
    %c0_i32_1 = arith.constant 0 : i32
    return %c0_i32, %c0_i32_0 : i32, i32
  }
  func.func @transform_11(%arg0: i32) -> (i32, i32) {
    %c0_i32 = arith.constant 0 : i32
    %c0_i32_0 = arith.constant 0 : i32
    %c0_i32_1 = arith.constant 0 : i32
    return %c0_i32, %c0_i32_0 : i32, i32
  }
  func.func @transform_12(%arg0: i32) -> (i32, i32) {
    %c0_i32 = arith.constant 0 : i32
    %c0_i32_0 = arith.constant 0 : i32
    %c0_i32_1 = arith.constant 0 : i32
    return %c0_i32, %c0_i32_0 : i32, i32
  }
  func.func @transform_13(%arg0: i32) -> (i32, i32) {
    %c0_i32 = arith.constant 0 : i32
    %c0_i32_0 = arith.constant 0 : i32
    %c0_i32_1 = arith.constant 0 : i32
    return %c0_i32, %c0_i32_0 : i32, i32
  }
  func.func @transform_14(%arg0: i32) -> (i32, i32, i32) {
    %c0_i32 = arith.constant 0 : i32
    %c0_i32_0 = arith.constant 0 : i32
    %c0_i32_1 = arith.constant 0 : i32
    return %arg0, %c0_i32, %c0_i32_0 : i32, i32, i32
  }
}

</mosaic_0001>

<bundles_post_ra>
// kernel: tpu_custom_call.1
= control target key start
LH: loop header
LB: loop body
LE: loop exit
PB: predicated region body
PF: predicated region fallthrough
CT: control target
= control target key end

     0   :  { %s2589_s0 = inlined_call_operand.vmem [shape: f32[2,32,32], index: 0, kind: input, shape index: {}]   ;;  %s2590_s1 = inlined_call_operand.vmem [shape: f32[2,4,1,8], index: 1, kind: input, shape index: {}]   ;;  %s2591_s2 = inlined_call_operand.hbm [shape: f32[4,32,32], index: 2, kind: input, shape index: {}]   ;;  %s2592_s3 = inlined_call_operand.hbm [shape: f32[4,32], index: 3, kind: input, shape index: {}]   ;;  %s2593_s4 = inlined_call_operand.hbm [shape: f32[2,32], index: 4, kind: input, shape index: {}]   ;;  %s2594_s5 = inlined_call_operand.vmem [shape: f32[32,64], index: 5, kind: input, shape index: {}]   ;;  %s2595_s6 = inlined_call_operand.vmem [shape: f32[1,64], index: 6, kind: input, shape index: {}]   ;;  %s2596_s7 = inlined_call_operand.vmem [shape: f32[64,32], index: 7, kind: input, shape index: {}]   ;;  %s2597_s8 = inlined_call_operand.hbm [shape: f32[1,32], index: 8, kind: input, shape index: {}]   ;;  %s2598_s9 = inlined_call_operand.hbm [shape: f32[2,32], index: 9, kind: input, shape index: {}]   ;;  %s2599_s10 = inlined_call_operand.vmem [shape: f32[32,1], index: 10, kind: input, shape index: {}]   ;;  %s2600_s11 = inlined_call_operand.<no memory space> [shape: f32[1,1], index: 11, kind: input, shape index: {}]   ;;  %s2601_s12 = inlined_call_operand.hbm [shape: f32[32,128], index: 12, kind: input, shape index: {}]   ;;  %s2602_s13 = inlined_call_operand.vmem [shape: f32[1,128], index: 13, kind: input, shape index: {}]   ;;  %s2603_s14 = inlined_call_operand.hbm [shape: f32[2,8,128], index: 14, kind: output, shape index: {}]  }
   0x1   :  { %2610 = sst [smem:[#allocation27_spill]] %s2591_s2  ;;  %v19_v0 = vstv %s2600_s11 }
   0x2   :  { %2611 = sst [smem:[#allocation28_spill]] %s2592_s3  ;;  %20 = vst [vmem:[#allocation3] sm:$0x1] %v19_v0 }
   0x3   :  { %2612 = sst [smem:[#allocation29_spill]] %s2597_s8 }
   0x4   :  { %21 = vsyncpa [#allocation5], 0 }
   0x5   :  { %22 = vsyncpa [#allocation8], 0 }
   0x6   :  { %23 = vsyncpa [#allocation11], 0 }
   0x7   :  { %24 = vsyncpa [#allocation14], 0 }
   0x8   :  { %25 = vsyncpa [#allocation6], 0 }
   0x9   :  { %27 = vsyncpa [#allocation6 + $0x1], 0  ;;  %s2228_s15 = smov 0   ;;  %s2230_s16 = smov 0  }
   0xa   :  { %s2232_s17 = smov 0   ;;  %s2234_s18 = smov 0  }
   0xb LB: > { %2613 = sst [smem:[#allocation21_spill]] %s2126_s15  ;;  %s2249_s11 = sadd.s32 4294967295, %s2138_s18   ;;  %s2138_s18 = sphi %s2234_s18, %s2629_s18   ;;  %s2134_s17 = sphi %s2232_s17, %s2631_s17   ;;  %s2130_s16 = sphi %s2230_s16, %s2633_s16   ;;  %s2126_s15 = sphi %s2228_s15, %s2632_s15  }
   0xc   : > { %2614 = sst [smem:[#allocation22_spill]] %s2134_s17  ;;  %s1651_s19 = sadd.s32 4294967294, %s2138_s18  }
   0xd   : > { %2615 = sst [smem:[#allocation23_spill]] %s2138_s18  ;;  %s2253_s20 = sadd.s32 1, %s2138_s18  }
   0xe   : > { %2616 = sst [smem:[#allocation24_spill]] %s2253_s20  ;;  %s344_s21 = sadd.s32 1, %s2134_s17 }
   0xf   : > { %s341_s22 = ssub.s32 %s2138_s18, %s2253_s20  ;;  %p354_p0 = scmp.ne.s32.totalorder %s2134_s17, %s2130_s16 }
  0x10   : > { %p342_p1 = scmp.eq.s32.totalorder %s341_s22, 0  ;;  %p355_p2 = scmp.eq.s32.totalorder %s2249_s11, 1 }
  0x11   : > { %p360_p3 = scmp.ne.s32.totalorder %s2130_s16, %s2126_s15  ;;  %p361_p4 = scmp.eq.s32.totalorder %s1651_s19, 1 }
  0x12   : > { %s2264_s23 = scalar_select %p342_p1, %s2134_s17, %s344_s21  }
  0x13   : > { %p2266_p5 = por %p355_p2, %p354_p0  ;;  %p2270_p6 = por %p361_p4, %p360_p3 }
  0x14   : > { %2617 = sst [smem:[#allocation25_spill]] %s2264_s23  ;;  %p1652_p7 = scmp.ge.s32.totalorder %s2138_s18, 1 }
  0x15   : > { %s2619_s25 = scalar_select %p2270_p6, 1, 0 }
  0x16   : > { %p368_p8 = scmp.lt.s32.totalorder %s2138_s18, 3  ;;  %p1763_p9 = scmp.eq.s32.totalorder %s2249_s11, 0 }
  0x17   : > { %2620 = sst [smem:[#allocation26_spill]] %s2619_s25  ;;  %s2140_s30 = smov [#allocation7]  }
  0x18   : > { %p2277_p10 = pnand %p1652_p7, %p368_p8  ;;  %s2622_s3 = sld [smem:[#allocation28_spill]] }
  0x19   : > { %s396_s19 = sshll.u32 %s2140_s30, 4  ;;  %s2623_s8 = sld [smem:[#allocation29_spill]]  ;;  %s397_s19 = int_to_ptr.vmem [resolvable:$true] %s396_s19 }
  0x1a   : > { %p1740_p11 = pneg %p2277_p10  ;;  %s2625_s2 = sld [smem:[#allocation27_spill]] }
  0x1b   : > { %s2141_s20 = smov [#allocation10]   ;;  %s2142_s21 = smov [#allocation4]  }
  0x1c   : > { %p2291_p12 = pnand %p1763_p9, %p1740_p11  ;;  %s429_s30 = sshll.u32 %s2141_s20, 4  ;;  %s430_s30 = int_to_ptr.vmem [resolvable:$true] %s429_s30 }
  0x1d   : > { %s381_s22 = sshll.u32 %s2142_s21, 4  ;;  %s406_s15 = sshll.u32 %s2593_s4, 4  ;;  %s382_s22 = int_to_ptr.vmem [resolvable:$true] %s381_s22  ;;  %s407_s15 = int_to_ptr.hbm [resolvable:$true] %s406_s15 }
  0x1e   : > { %s394_s29 = sshll.u32 %s2622_s3, 4  ;;  %s2143_s18 = smov 128   ;;  %s395_s29 = int_to_ptr.hbm [resolvable:$true] %s394_s29 }
  0x1f   : > { %s427_s23 = sshll.u32 %s2623_s8, 4  ;;  %s2144_s27 = smov 8   ;;  %s428_s23 = int_to_ptr.hbm [resolvable:$true] %s427_s23 }
  0x20   : > { %s379_s3 = sshll.u32 %s2625_s2, 4  ;;  %s2145_s20 = smov [#allocation9]   ;;  %s380_s3 = int_to_ptr.hbm [resolvable:$true] %s379_s3 }
  0x21   : > { %1746 = dma.hbm_to_vmem [thread:$0]  (!%p2291_p12), %s395_s29, 64, %s397_s19, [#allocation8]  }
  0x22   : > { %1752 = dma.hbm_to_vmem [thread:$0]  (!%p2291_p12), %s428_s23, 16, %s430_s30, [#allocation11]  }
  0x23   : > { %1743 = dma.hbm_to_vmem [thread:$0]  (!%p2291_p12), %s380_s3, 2048, %s382_s22, [#allocation5], %s2143_s18, %s2143_s18, %s2144_s27  }
  0x24   : > { %s408_s29 = sshll.u32 %s2145_s20, 4  ;;  %s439_s23 = sshll.u32 %s2598_s9, 4  ;;  %s409_s29 = int_to_ptr.vmem [resolvable:$true] %s408_s29  ;;  %s440_s23 = int_to_ptr.hbm [resolvable:$true] %s439_s23 }
  0x25   : > { %1749 = dma.hbm_to_vmem [thread:$0]  (!%p2291_p12), %s407_s15, 32, %s409_s29, [#allocation8]  }
  0x26   : > { %s456_s25 = sshll.u32 %s2601_s12, 4  ;;  %s2146_s21 = smov [#allocation12]   ;;  %s457_s25 = int_to_ptr.hbm [resolvable:$true] %s456_s25 }
  0x27   : > { %s441_s2 = sshll.u32 %s2146_s21, 4  ;;  %s2147_s3 = smov [#allocation13]   ;;  %s442_s2 = int_to_ptr.vmem [resolvable:$true] %s441_s2 }
  0x28   : > { %1755 = dma.hbm_to_vmem [thread:$0]  (!%p2291_p12), %s440_s23, 32, %s442_s2, [#allocation11]  }
  0x29   : > { %s458_s22 = sshll.u32 %s2147_s3, 4  ;;  %492 = sbr.rel (%p2277_p10) target bundleno = 2183 (0x887), region = 76  ;;  %s459_s22 = int_to_ptr.vmem [resolvable:$true] %s458_s22 }
  0x2a   : > { %1758 = dma.hbm_to_vmem [thread:$0]  (!%p2291_p12), %s457_s25, 512, %s459_s22, [#allocation14], %s2143_s18, %s2143_s18, %s2144_s27  }
  0x2e   : > { %2105 = dma.done.wait (%p1763_p9), [#allocation5], 2048  }
  0x2f   : > { %2107 = vsyncadd (%p1763_p9), [#allocation5], 4294965248 }
  0x30   : > { %2109 = dma.done.wait (%p1763_p9), [#allocation8], 96  }
  0x31   : > { %2111 = vsyncadd (%p1763_p9), [#allocation8], 4294967200 }
  0x32   : > { %2113 = dma.done.wait (%p1763_p9), [#allocation11], 48  }
  0x33   : > { %2115 = vsyncadd (%p1763_p9), [#allocation11], 4294967248 }
  0x34   : > { %2117 = dma.done.wait (%p1763_p9), [#allocation14], 512  }
  0x35   : > { %2119 = vsyncadd (%p1763_p9), [#allocation14], 4294966784  ;;  %p568_p13 = scmp.lt.s32.totalorder %s2249_s11, 1  ;;  %v593_v1 = vld [vmem:[#allocation4 + $0x38] sm:$0xff]  ;;  %v592_v3 = vld [vmem:[#allocation4 + $0x30] sm:$0xff]  ;;  %vm606_vm0 = vcmask 261120  }
  0x36   : > { %v588_v2 = vld [vmem:[#allocation4 + $0x18] sm:$0xff]  ;;  %666 = vmatpush.msra.mxu1 %v593_v1  ;;  %v587_v4 = vld [vmem:[#allocation4 + $0x10] sm:$0xff]  ;;  %v591_v5 = vld [vmem:[#allocation4 + $0x28] sm:$0xff]  ;;  %v2148_v35 = vmov 0   ;;  %vm838_vm4 = vcmask 64512   ;;  %s565_s30 = sand.u32 1, %s2130_s16  }
  0x37   : > { %s2339_s2 = scalar_select %p568_p13, %s2249_s11, 1  ;;  %631 = vmatpush.msra.mxu0 %v588_v2  ;;  %v586_v6 = vld [vmem:[#allocation4 + $0x8] sm:$0xff]  ;;  %v590_v7 = vld [vmem:[#allocation4 + $0x20] sm:$0xff]  ;;  %1818 = vset.pattern.permute.xlu0 %v2148_v35  ;;  %v598_v40 = vld [vmem:[#allocation4 + $0x58] sm:$0xff] }
  0x38   : > { %667 = vmatpush.msra.mxu1 %v592_v3  ;;  %v585_v8 = vld [vmem:[#allocation4] sm:$0xff]  ;;  %v597_v41 = vld [vmem:[#allocation4 + $0x50] sm:$0xff]  ;;  %697 = vmatpush.msra.mxu2 %v598_v40  ;;  %v596_v42 = vld [vmem:[#allocation4 + $0x48] sm:$0xff]  ;;  %s1667_s8 = sshll.u32 %s565_s30, 3  ;;  %s1710_s25 = sshll.u32 %s2249_s11, 3 }
  0x39   : > { %s1713_s15 = sshll.u32 %s2339_s2, 5  ;;  %632 = vmatpush.msra.mxu0 %v587_v4  ;;  %v1819_v13 = vld [vmem:[#allocation7 + $0x1] ss:$0 sm:$0xff]  ;;  %v1820_v14 = vld [vmem:[#allocation7] ss:$0 sm:$0xff]  ;;  %s1670_s27 = sshll.u32 %s2339_s2, 2 }
  0x3a   : > { %s572_s26 = scalar_lea.vmem %s2589_s0, %s1713_s15  ;;  %668 = vmatpush.msra.mxu1 %v591_v5  ;;  %s576_s19 = scalar_lea.vmem %s2590_s1, %s1670_s27  ;;  %698 = vmatpush.msra.mxu2 %v597_v41  ;;  %v595_v44 = vld [vmem:[#allocation4 + $0x40] sm:$0xff] }
  0x3b   : > { %v2345_v9 = vld [vmem:[%s572_s26] sm:$0xff]  ;;  %633 = vmatpush.msra.mxu0 %v586_v6  ;;  %v2351_v10 = vld [vmem:[%s572_s26 + $0x8] sm:$0xff]  ;;  %v2357_v11 = vld [vmem:[%s572_s26 + $0x10] sm:$0xff]  ;;  %s1515_s22 = scalar_lea.hbm %s2603_s14, %s1710_s25  ;;  %s567_s2 = scalar_lea.vmem [#allocation15], %s1667_s8 }
  0x3c   : > { %669 = vmatpush.msra.mxu1 %v590_v7  ;;  %v2363_v12 = vld [vmem:[%s572_s26 + $0x18] sm:$0xff]  ;;  %v581_v36 = vld [vmem:[%s576_s19] sm:$0x1]  ;;  %v582_v38 = vld [vmem:[%s576_s19 + $0x1] sm:$0x1]  ;;  %699 = vmatpush.msra.mxu2 %v596_v42  ;;  %s1517_s15 = sshll.u32 %s567_s2, 4  ;;  %s1518_s15 = int_to_ptr.vmem [resolvable:$true] %s1517_s15 }
  0x3d   : > { %634 = vmatpush.msra.mxu0 %v585_v8  ;;  %1675 = vmatmul.msk.f32.vlgmr.msra.gmra.mxu1 %vm606_vm0, %v2345_v9  ;;  %vm818_vm1 = vcmp.gt.f32.partialorder %v581_v36, 0.5  ;;  %vm819_vm2 = vcmp.gt.f32.partialorder %v582_v38, 0.5  ;;  %v583_v47 = vld [vmem:[%s576_s19 + $0x2] sm:$0x1]  ;;  %v584_v53 = vld [vmem:[%s576_s19 + $0x3] sm:$0x1] }
  0x3e   : > { %1671 = vmatmul.msk.f32.vlgmr.msra.gmra.mxu0 %vm606_vm0, %v2345_v9  ;;  %v822_v37 = vsel %vm818_vm1, 1, %v2148_v35  ;;  %v823_v43 = vsel %vm819_vm2, 1, %v2148_v35  ;;  %700 = vmatpush.msra.mxu2 %v595_v44  ;;  %vm820_vm5 = vcmp.gt.f32.partialorder %v583_v47, 0.5  ;;  %vm821_vm7 = vcmp.gt.f32.partialorder %v584_v53, 0.5  ;;  %v1821_v8 = vld [vmem:[#allocation7 + $0x2] ss:$0 sm:$0xff] }
  0x3f   : > { %v826_v39 = vperm.slane %v822_v37, 0  ;;  %v827_v49 = vperm.slane %v823_v43, 0  ;;  %1679 = vmatmul.msk.f32.vlgmr.msra.gmra.mxu2 %vm606_vm0, %v2345_v9  ;;  %v824_v50 = vsel %vm820_vm5, 1, %v2148_v35  ;;  %v825_v56 = vsel %vm821_vm7, 1, %v2148_v35  ;;  %v602_v35 = vld [vmem:[#allocation4 + $0x70] sm:$0xff]  ;;  %v601_v36 = vld [vmem:[#allocation4 + $0x68] sm:$0xff] }
  0x40   : > { %v828_v55 = vperm.slane %v824_v50, 0  ;;  %v829_v60 = vperm.slane %v825_v56, 0  ;;  %v1822_v53 = vld [vmem:[#allocation7 + $0x3] ss:$0 sm:$0xff]  ;;  %s1519_s17 = sshll.u32 %s1515_s22, 4  ;;  %s1505_s11 = scalar_lea.sflag [#allocation6], %s565_s30  ;;  %s1520_s17 = int_to_ptr.hbm [resolvable:$true] %s1519_s17 }
  0x41   : > { %vm830_vm3 = vcmp.eq.s32.totalorder %v826_v39, 1  ;;  %vm831_vm6 = vcmp.eq.s32.totalorder %v827_v49, 1  ;;  %s2074_s18 = sshra.s32 %s1520_s17, 4  ;;  %s2080_s29 = scalar_lea.hbm %s2603_s14, 16  ;;  %s2075_s18 = int_to_ptr.hbm [resolvable:$true] %s2074_s18 }
  0x42   : > { %vm832_vm8 = vcmp.eq.s32.totalorder %v828_v55, 1  ;;  %vm833_vm9 = vcmp.eq.s32.totalorder %v829_v60, 1  ;;  %s2076_s26 = scalar_lea.hbm %s2075_s18, 8  ;;  %p2081_p3 = scmp.lt.s32.totalorder %s2075_s18, %s2603_s14 }
  0x43   : > { %p2077_p0 = scmp.ne.s32.totalorder %s2075_s18, %s2076_s26  ;;  %p2082_p4 = scmp.lt.s32.totalorder %s2080_s29, %s2076_s26 }
  0x45   : > { %1676 = vmatmul.msk.f32.gmra.mxu1 %vm606_vm0, %v2351_v10  ;;  %p2078_p1 = pnand %p2077_p0, %p2266_p5  ;;  %p2083_p7 = por %p2082_p4, %p2081_p3 }
  0x46   : > { %1672 = vmatmul.msk.f32.gmra.mxu0 %vm606_vm0, %v2351_v10 }
  0x47   : > { %1680 = vmatmul.msk.f32.gmra.mxu2 %vm606_vm0, %v2351_v10  ;;  %p2079_p2 = pneg %p2078_p1 }
  0x49   : > { %p2084_p8 = pnand %p2083_p7, %p2079_p2 }
  0x4d   : > { %1677 = vmatmul.msk.f32.gmra.mxu1 %vm606_vm0, %v2357_v11 }
  0x4e   : > { %1673 = vmatmul.msk.f32.gmra.mxu0 %vm606_vm0, %v2357_v11 }
  0x4f   : > { %1681 = vmatmul.msk.f32.gmra.mxu2 %vm606_vm0, %v2357_v11 }
  0x55   : > { %1678 = vmatmul.msk.f32.gmra.mxu1 %vm606_vm0, %v2363_v12 }
  0x56   : > { %1674 = vmatmul.msk.f32.gmra.mxu0 %vm606_vm0, %v2363_v12 }
  0x57   : > { %1682 = vmatmul.msk.f32.gmra.mxu2 %vm606_vm0, %v2363_v12 }
  0xba   : > { %v671_v15 = vpop.f32.mrf.mxu1 }
  0xbb   : > { %v636_v16 = vpop.f32.mrf.mxu0  ;;  %v672_v17 = vadd.f32 %v1819_v13, %v671_v15 }
  0xbc   : > { %v637_v18 = vadd.f32 %v1820_v14, %v636_v16 }
  0xbd   : > { %1683 = vmatpush.xpose.msk.msra.mxu3 %vm606_vm0, %v672_v17 }
  0xbe   : > { %v648_v19 = vmul.f32 0.17677669, %v637_v18 }
  0xc0   : > { %1684 = vmatmul.msk.f32.vlgmr.msra.gmra.mxu3 %vm606_vm0, %v648_v19 }
  0xc2   : > { %v674_v20 = vpop.f32.mrf.mxu1 }
  0xc3   : > { %v639_v21 = vpop.f32.mrf.mxu0  ;;  %v675_v22 = vadd.f32 %v1819_v13, %v674_v20 }
  0xc4   : > { %v640_v23 = vadd.f32 %v1820_v14, %v639_v21 }
  0xc5   : > { %1685 = vmatpush.xpose.msk.msrb.mxu3 %vm606_vm0, %v675_v22 }
  0xc6   : > { %v649_v24 = vmul.f32 0.17677669, %v640_v23 }
  0xc8   : > { %1686 = vmatmul.msk.f32.vlgmr.msrb.gmra.mxu3 %vm606_vm0, %v649_v24 }
  0xca   : > { %v677_v25 = vpop.f32.mrf.mxu1 }
  0xcb   : > { %v642_v26 = vpop.f32.mrf.mxu0  ;;  %v678_v27 = vadd.f32 %v1819_v13, %v677_v25 }
  0xcc   : > { %v643_v28 = vadd.f32 %v1820_v14, %v642_v26 }
  0xcd   : > { %1687 = vmatpush.xpose.msk.msra.mxu3 %vm606_vm0, %v678_v27 }
  0xce   : > { %v650_v29 = vmul.f32 0.17677669, %v643_v28 }
  0xd0   : > { %1688 = vmatmul.msk.f32.vlgmr.msra.gmra.mxu3 %vm606_vm0, %v650_v29 }
  0xd2   : > { %v680_v30 = vpop.f32.mrf.mxu1 }
  0xd3   : > { %v645_v31 = vpop.f32.mrf.mxu0  ;;  %v681_v32 = vadd.f32 %v1819_v13, %v680_v30 }
  0xd4   : > { %v646_v33 = vadd.f32 %v1820_v14, %v645_v31  ;;  %v702_v14 = vpop.f32.mrf.mxu2 }
  0xd5   : > { %1689 = vmatpush.xpose.msk.msrb.mxu3 %vm606_vm0, %v681_v32  ;;  %v703_v16 = vadd.f32 %v1821_v8, %v702_v14 }
  0xd6   : > { %v651_v34 = vmul.f32 0.17677669, %v646_v33 }
  0xd8   : > { %1690 = vmatmul.msk.f32.vlgmr.msrb.gmra.mxu3 %vm606_vm0, %v651_v34  ;;  %v603_v34 = vld [vmem:[#allocation4 + $0x78] sm:$0xff] }
  0xd9   : > { %901 = vmatpush.msra.mxu3 %v703_v16 }
  0xdb   : > { %1001 = vmatpush.msrb.mxu3 %v603_v34  ;;  %v1131_v34 = vld [vmem:[%s2594_s5 + $0x10] sm:$0xff] }
  0xdc   : > { %v705_v21 = vpop.f32.mrf.mxu2 }
  0xdd   : > { %v706_v23 = vadd.f32 %v1821_v8, %v705_v21  ;;  %1002 = vmatpush.msrb.mxu3 %v602_v35  ;;  %v1130_v35 = vld [vmem:[%s2594_s5 + $0x8] sm:$0xff] }
  0xdf   : > { %924 = vmatpush.msrb.mxu0 %v706_v23  ;;  %1003 = vmatpush.msrb.mxu3 %v601_v36  ;;  %v1129_v36 = vld [vmem:[%s2594_s5] sm:$0xff] }
  0xe4   : > { %v708_v27 = vpop.f32.mrf.mxu2 }
  0xe5   : > { %v709_v28 = vadd.f32 %v1821_v8, %v708_v27 }
  0xe7   : > { %947 = vmatpush.msrb.mxu2 %v709_v28 }
  0xec   : > { %v711_v31 = vpop.f32.mrf.mxu2 }
  0xed   : > { %v712_v32 = vadd.f32 %v1821_v8, %v711_v31 }
  0xef   : > { %970 = vmatpush.msra.mxu2 %v712_v32 }
 0x143   : > { %v737_v45 = vpop.f32.mrf.mxu3 }
 0x144   : > { %v834_v46 = vsel %vm830_vm3, %v737_v45, -1e+09 }
 0x145   : > { %v839_v48 = vsel %vm838_vm4, %v834_v46, -inf }
 0x146   : > { %840 = vmax.xlane.f32.xlu0 %v839_v48  ;;  %v600_v48 = vld [vmem:[#allocation4 + $0x60] sm:$0xff] }
 0x147   : > { %1004 = vmatpush.msrb.mxu3 %v600_v48 }
 0x14b   : > { %v763_v51 = vpop.f32.mrf.mxu3 }
 0x14c   : > { %v835_v52 = vsel %vm831_vm6, %v763_v51, -1e+09 }
 0x14d   : > { %v842_v54 = vsel %vm838_vm4, %v835_v52, -inf }
 0x14e   : > { %843 = vmax.xlane.f32.xlu0 %v842_v54 }
 0x153   : > { %v789_v57 = vpop.f32.mrf.mxu3 }
 0x154   : > { %v836_v58 = vsel %vm832_vm8, %v789_v57, -1e+09  ;;  %vm1226_vm8 = vcmask 523264  }
 0x155   : > { %v845_v59 = vsel %vm838_vm4, %v836_v58, -inf }
 0x156   : > { %846 = vmax.xlane.f32.xlu1 %v845_v59 }
 0x15b   : > { %v815_v61 = vpop.f32.mrf.mxu3 }
 0x15c   : > { %v837_v62 = vsel %vm833_vm9, %v815_v61, -1e+09 }
 0x15d   : > { %v848_v63 = vsel %vm838_vm4, %v837_v62, -inf }
 0x15e   : > { %849 = vmax.xlane.f32.xlu1 %v848_v63 }
 0x1b9   : > { %v841_v0 = vpop.xlane.xlu0 %840 }
 0x1ba   : > { %v851_v1 = vsub.f32 %v834_v46, %v841_v0 }
 0x1bc   : > { %v855_v2 = vmul.f32 1.442695, %v851_v1 }
 0x1be   : > { %1830 = vpow2.f32 %v855_v2 }
 0x1c1   : > { %v844_v3 = vpop.xlane.xlu0 %843 }
 0x1c2   : > { %v852_v4 = vsub.f32 %v835_v52, %v844_v3 }
 0x1c4   : > { %v1831_v5 = vpop.eup %1830  ;;  %v857_v6 = vmul.f32 1.442695, %v852_v4 }
 0x1c5   : > { %v863_v7 = vsel %vm838_vm4, %v1831_v5, 0.0 }
 0x1c6   : > { %1832 = vpow2.f32 %v857_v6  ;;  %864 = vadd.xlane.f32.xlu2 %v863_v7 }
 0x1c9   : > { %v847_v13 = vpop.xlane.xlu1 %846 }
 0x1ca   : > { %v853_v15 = vsub.f32 %v836_v58, %v847_v13 }
 0x1cc   : > { %v1833_v17 = vpop.eup %1832  ;;  %v859_v18 = vmul.f32 1.442695, %v853_v15 }
 0x1cd   : > { %v866_v19 = vsel %vm838_vm4, %v1833_v17, 0.0 }
 0x1ce   : > { %1834 = vpow2.f32 %v859_v18  ;;  %867 = vadd.xlane.f32.xlu2 %v866_v19 }
 0x1d1   : > { %v850_v20 = vpop.xlane.xlu1 %849 }
 0x1d2   : > { %v854_v22 = vsub.f32 %v837_v62, %v850_v20 }
 0x1d4   : > { %v1835_v24 = vpop.eup %1834  ;;  %v861_v25 = vmul.f32 1.442695, %v854_v22 }
 0x1d5   : > { %v869_v26 = vsel %vm838_vm4, %v1835_v24, 0.0 }
 0x1d6   : > { %1836 = vpow2.f32 %v861_v25  ;;  %870 = vadd.xlane.f32.xlu0 %v869_v26 }
 0x1dc   : > { %v1837_v29 = vpop.eup %1836 }
 0x1dd   : > { %v872_v30 = vsel %vm838_vm4, %v1837_v29, 0.0 }
 0x1de   : > { %873 = vadd.xlane.f32.xlu1 %v872_v30 }
 0x239   : > { %v865_v33 = vpop.xlane.xlu2 %864 }
 0x23a   : > { %1838 = vrcp.f32 %v865_v33  ;;  %v1132_v33 = vld [vmem:[%s2594_s5 + $0x18] sm:$0xff] }
 0x23b   : > { %1161 = vmatpush.msra.mxu0 %v1132_v33  ;;  %v1216_v33 = vld [vmem:[%s2596_s7 + $0x10] sm:$0xff] }
 0x23d   : > { %1162 = vmatpush.msra.mxu0 %v1131_v34  ;;  %v1215_v34 = vld [vmem:[%s2596_s7 + $0x8] sm:$0xff] }
 0x23f   : > { %1163 = vmatpush.msra.mxu0 %v1130_v35  ;;  %v1214_v35 = vld [vmem:[%s2596_s7] sm:$0xff] }
 0x240   : > { %v1839_v37 = vpop.eup %1838 }
 0x241   : > { %v879_v38 = vmul.f32 %v1839_v37, %v1831_v5  ;;  %v868_v39 = vpop.xlane.xlu2 %867  ;;  %v2149_v5 = vmov 32.0   ;;  %1164 = vmatpush.msra.mxu0 %v1129_v36  ;;  %v1825_v36 = vld [vmem:[%s2595_s6] ss:$0 sm:$0xff] }
 0x242   : > { %1840 = vrcp.f32 %v868_v39 }
 0x243   : > { %1691 = vmatmul.msk.f32.vlgmr.msra.gmra.mxu3 %vm838_vm4, %v879_v38 }
 0x248   : > { %v1841_v40 = vpop.eup %1840 }
 0x249   : > { %v871_v41 = vpop.xlane.xlu0 %870  ;;  %v880_v42 = vmul.f32 %v1841_v40, %v1833_v17 }
 0x24a   : > { %1842 = vrcp.f32 %v871_v41 }
 0x24b   : > { %1692 = vmatmul.msk.f32.vlgmr.msrb.gmra.mxu0 %vm838_vm4, %v880_v42 }
 0x250   : > { %v1843_v43 = vpop.eup %1842 }
 0x251   : > { %v874_v44 = vpop.xlane.xlu1 %873  ;;  %v881_v45 = vmul.f32 %v1843_v43, %v1835_v24 }
 0x252   : > { %1844 = vrcp.f32 %v874_v44 }
 0x253   : > { %1693 = vmatmul.msk.f32.vlgmr.msrb.gmra.mxu2 %vm838_vm4, %v881_v45  ;;  %1846 = vrcp.f32 %v2149_v5 }
 0x258   : > { %v1845_v46 = vpop.eup %1844 }
 0x259   : > { %v882_v47 = vmul.f32 %v1845_v46, %v1837_v29 }
 0x25b   : > { %1694 = vmatmul.msk.f32.vlgmr.msra.gmra.mxu2 %vm838_vm4, %v882_v47 }
 0x2c6   : > { %v903_v49 = vpop.f32.mrf.mxu3 }
 0x2c7   : > { %1695 = vmatmul.msk.f32.vlgmr.msrb.gmra.mxu3 %vm606_vm0, %v903_v49 }
 0x2c8   : > { %v926_v50 = vpop.f32.mrf.mxu0 }
 0x2cf   : > { %1696 = vmatmul.msk.f32.gmra.mxu3 %vm606_vm0, %v926_v50 }
 0x2d6   : > { %v949_v51 = vpop.f32.mrf.mxu2 }
 0x2d7   : > { %1697 = vmatmul.msk.f32.gmra.mxu3 %vm606_vm0, %v949_v51 }
 0x2de   : > { %v972_v52 = vpop.f32.mrf.mxu2 }
 0x2df   : > { %1698 = vmatmul.msk.f32.gmra.mxu3 %vm606_vm0, %v972_v52 }
 0x34a   : > { %v1006_v54 = vpop.f32.mrf.mxu3 }
 0x34b   : > { %v1007_v55 = vadd.f32 %v1822_v53, %v1006_v54  ;;  %v1823_v54 = vld [vmem:[#allocation9] ss:$0 sm:$0xff] }
 0x34d   : > { %v1018_v56 = vadd.f32 %v1007_v55, %v2345_v9  ;;  %v1221_v55 = vld [vmem:[%s2596_s7 + $0x38] sm:$0xff] }
 0x34e   : > { %1247 = vmatpush.msrb.mxu1 %v1221_v55 }
 0x34f   : > { %v1024_v57 = vsel %vm606_vm0, %v1018_v56, 0.0 }
 0x350   : > { %1025 = vadd.xlane.f32.xlu2 %v1024_v57 }
 0x352   : > { %v1009_v58 = vpop.f32.mrf.mxu3 }
 0x353   : > { %v1010_v59 = vadd.f32 %v1822_v53, %v1009_v58 }
 0x355   : > { %v1019_v60 = vadd.f32 %v1010_v59, %v2351_v10  ;;  %v1847_v10 = vpop.eup %1846  ;;  %v1824_v59 = vld [vmem:[#allocation9 + $0x1] ss:$0 sm:$0xff] }
 0x356   : > { %v1037_v6 = vmul.f32 32.0, %v1847_v10  ;;  %vm1041_vm10 = vweird.f32 %v1847_v10 }
 0x357   : > { %v1027_v61 = vsel %vm606_vm0, %v1019_v60, 0.0 }
 0x358   : > { %1028 = vadd.xlane.f32.xlu0 %v1027_v61  ;;  %v1038_v7 = vsub.f32 1.0, %v1037_v6 }
 0x35a   : > { %v1012_v62 = vpop.f32.mrf.mxu3  ;;  %v1039_v8 = vmul.f32 %v1847_v10, %v1038_v7 }
 0x35b   : > { %v1013_v63 = vadd.f32 %v1822_v53, %v1012_v62 }
 0x35c   : > { %v1040_v13 = vadd.f32 %v1847_v10, %v1039_v8 }
 0x35d   : > { %v1020_v0 = vadd.f32 %v1013_v63, %v2357_v11 }
 0x35e   : > { %v2413_v14 = vsel %vm1041_vm10, %v1847_v10, %v1040_v13 }
 0x35f   : > { %v1030_v1 = vsel %vm606_vm0, %v1020_v0, 0.0 }
 0x360   : > { %1031 = vadd.xlane.f32.xlu1 %v1030_v1 }
 0x362   : > { %v1015_v2 = vpop.f32.mrf.mxu3 }
 0x363   : > { %v1016_v3 = vadd.f32 %v1822_v53, %v1015_v2 }
 0x365   : > { %v1021_v9 = vadd.f32 %v1016_v3, %v2363_v12 }
 0x367   : > { %v1033_v4 = vsel %vm606_vm0, %v1021_v9, 0.0 }
 0x368   : > { %1034 = vadd.xlane.f32.xlu2 %v1033_v4 }
 0x3c3   : > { %v1026_v11 = vpop.xlane.xlu2 %1025 }
 0x3c4   : > { %v1043_v15 = vmul.f32 %v2413_v14, %v1026_v11 }
 0x3c6   : > { %v1047_v16 = vsub.f32 %v1018_v56, %v1043_v15 }
 0x3c8   : > { %v1051_v17 = vmul.f32 %v1047_v16, %v1047_v16 }
 0x3ca   : > { %v1055_v12 = vsel %vm606_vm0, %v1051_v17, 0.0 }
 0x3cb   : > { %v1029_v18 = vpop.xlane.xlu0 %1028  ;;  %1056 = vadd.xlane.f32.xlu0 %v1055_v12 }
 0x3cc   : > { %v1044_v19 = vmul.f32 %v2413_v14, %v1029_v18 }
 0x3ce   : > { %v2418_v20 = vsub.f32 %v1019_v60, %v1044_v19 }
 0x3d0   : > { %v1052_v21 = vmul.f32 %v2418_v20, %v2418_v20 }
 0x3d2   : > { %v1058_v22 = vsel %vm606_vm0, %v1052_v21, 0.0 }
 0x3d3   : > { %1059 = vadd.xlane.f32.xlu1 %v1058_v22  ;;  %v1032_v23 = vpop.xlane.xlu1 %1031 }
 0x3d4   : > { %v1045_v24 = vmul.f32 %v2413_v14, %v1032_v23 }
 0x3d6   : > { %v2424_v25 = vsub.f32 %v1020_v0, %v1045_v24 }
 0x3d8   : > { %v1053_v26 = vmul.f32 %v2424_v25, %v2424_v25 }
 0x3da   : > { %v1061_v27 = vsel %vm606_vm0, %v1053_v26, 0.0 }
 0x3db   : > { %v1035_v28 = vpop.xlane.xlu2 %1034  ;;  %1062 = vadd.xlane.f32.xlu2 %v1061_v27 }
 0x3dc   : > { %v1046_v29 = vmul.f32 %v2413_v14, %v1035_v28 }
 0x3de   : > { %v2430_v30 = vsub.f32 %v1021_v9, %v1046_v29 }
 0x3e0   : > { %v1054_v31 = vmul.f32 %v2430_v30, %v2430_v30 }
 0x3e2   : > { %v1064_v32 = vsel %vm606_vm0, %v1054_v31, 0.0  ;;  %v1219_v31 = vld [vmem:[%s2596_s7 + $0x28] sm:$0xff] }
 0x3e3   : > { %1065 = vadd.xlane.f32.xlu0 %v1064_v32  ;;  %v1217_v32 = vld [vmem:[%s2596_s7 + $0x18] sm:$0xff] }
 0x43e   : > { %v1057_v37 = vpop.xlane.xlu0 %1056 }
 0x43f   : > { %v1067_v38 = vmul.f32 %v1057_v37, %v2413_v14 }
 0x441   : > { %v1071_v39 = vadd.f32 1e-05, %v1067_v38 }
 0x443   : > { %1848 = vrsqrt.f32 %v1071_v39  ;;  %vm1081_vm12 = vweird.f32 %v1071_v39 }
 0x446   : > { %v1060_v40 = vpop.xlane.xlu1 %1059 }
 0x447   : > { %v1068_v41 = vmul.f32 %v1060_v40, %v2413_v14 }
 0x449   : > { %v1849_v42 = vpop.eup %1848  ;;  %v1072_v43 = vadd.f32 1e-05, %v1068_v41 }
 0x44a   : > { %v1076_v44 = vmul.f32 %v1849_v42, %v1071_v39  ;;  %vm1082_vm11 = vweird.f32 %v1849_v42 }
 0x44b   : > { %1850 = vrsqrt.f32 %v1072_v43  ;;  %vm1083_vm13 = vmor %vm1081_vm12, %vm1082_vm11  ;;  %vm1091_vm15 = vweird.f32 %v1072_v43 }
 0x44c   : > { %v1077_v45 = vmul.f32 %v1849_v42, %v1076_v44 }
 0x44e   : > { %v1078_v46 = vmul.f32 0.5, %v1077_v45  ;;  %v1063_v47 = vpop.xlane.xlu2 %1062 }
 0x44f   : > { %v1069_v48 = vmul.f32 %v1063_v47, %v2413_v14 }
 0x450   : > { %v1079_v49 = vsub.f32 1.5, %v1078_v46 }
 0x451   : > { %v1851_v50 = vpop.eup %1850  ;;  %v1073_v51 = vadd.f32 1e-05, %v1069_v48 }
 0x452   : > { %v1080_v52 = vmul.f32 %v1849_v42, %v1079_v49  ;;  %v1086_v53 = vmul.f32 %v1851_v50, %v1072_v43  ;;  %vm1092_vm14 = vweird.f32 %v1851_v50 }
 0x453   : > { %1852 = vrsqrt.f32 %v1073_v51  ;;  %vm1093_vm1 = vmor %vm1091_vm15, %vm1092_vm14  ;;  %vm1101_vm3 = vweird.f32 %v1073_v51 }
 0x454   : > { %v1084_v56 = vsel %vm1083_vm13, %v1849_v42, %v1080_v52  ;;  %v1087_v57 = vmul.f32 %v1851_v50, %v1086_v53 }
 0x455   : > { %v1115_v58 = vmul.f32 %v1084_v56, %v1047_v16 }
 0x456   : > { %v1088_v60 = vmul.f32 0.5, %v1087_v57  ;;  %v1066_v61 = vpop.xlane.xlu0 %1065 }
 0x457   : > { %v1120_v62 = vmul.f32 %v1823_v54, %v1115_v58  ;;  %v1070_v63 = vmul.f32 %v1066_v61, %v2413_v14 }
 0x458   : > { %v1089_v0 = vsub.f32 1.5, %v1088_v60 }
 0x459   : > { %v1853_v1 = vpop.eup %1852  ;;  %v1074_v2 = vadd.f32 1e-05, %v1070_v63  ;;  %v2454_v3 = vadd.f32 %v1824_v59, %v1120_v62 }
 0x45a   : > { %v1090_v9 = vmul.f32 %v1851_v50, %v1089_v0  ;;  %v1096_v4 = vmul.f32 %v1853_v1, %v1073_v51  ;;  %vm1102_vm2 = vweird.f32 %v1853_v1 }
 0x45b   : > { %1854 = vrsqrt.f32 %v1074_v2  ;;  %1699 = vmatmul.msk.f32.vlgmr.msra.gmra.mxu0 %vm606_vm0, %v2454_v3  ;;  %vm1103_vm4 = vmor %vm1101_vm3, %vm1102_vm2  ;;  %vm1111_vm6 = vweird.f32 %v1074_v2 }
 0x45c   : > { %v1094_v5 = vsel %vm1093_vm1, %v1851_v50, %v1090_v9  ;;  %v1097_v10 = vmul.f32 %v1853_v1, %v1096_v4 }
 0x45d   : > { %v1116_v6 = vmul.f32 %v1094_v5, %v2418_v20 }
 0x45e   : > { %v1098_v7 = vmul.f32 0.5, %v1097_v10 }
 0x45f   : > { %v1121_v8 = vmul.f32 %v1823_v54, %v1116_v6 }
 0x460   : > { %v1099_v13 = vsub.f32 1.5, %v1098_v7 }
 0x461   : > { %v1855_v11 = vpop.eup %1854  ;;  %v2459_v15 = vadd.f32 %v1824_v59, %v1121_v8 }
 0x462   : > { %v1100_v16 = vmul.f32 %v1853_v1, %v1099_v13  ;;  %v1106_v17 = vmul.f32 %v1855_v11, %v1074_v2  ;;  %vm1112_vm5 = vweird.f32 %v1855_v11 }
 0x463   : > { %1700 = vmatmul.msk.f32.gmra.mxu0 %vm606_vm0, %v2459_v15  ;;  %vm1113_vm7 = vmor %vm1111_vm6, %vm1112_vm5  ;;  %vm1408_vm6 = vcmask 3072  }
 0x464   : > { %v1104_v12 = vsel %vm1103_vm4, %v1853_v1, %v1100_v16  ;;  %v1107_v18 = vmul.f32 %v1855_v11, %v1106_v17 }
 0x465   : > { %v1117_v19 = vmul.f32 %v1104_v12, %v2424_v25  ;;  %v1220_v25 = vld [vmem:[%s2596_s7 + $0x30] sm:$0xff] }
 0x466   : > { %v1108_v21 = vmul.f32 0.5, %v1107_v18  ;;  %1248 = vmatpush.msrb.mxu1 %v1220_v25 }
 0x467   : > { %v1122_v20 = vmul.f32 %v1823_v54, %v1117_v19 }
 0x468   : > { %v1109_v22 = vsub.f32 1.5, %v1108_v21  ;;  %1249 = vmatpush.msrb.mxu1 %v1219_v31  ;;  %v1826_v21 = vld [vmem:[#allocation10] ss:$0 sm:$0xff] }
 0x469   : > { %v2464_v23 = vadd.f32 %v1824_v59, %v1122_v20 }
 0x46a   : > { %v1110_v24 = vmul.f32 %v1855_v11, %v1109_v22 }
 0x46b   : > { %1701 = vmatmul.msk.f32.gmra.mxu0 %vm606_vm0, %v2464_v23 }
 0x46c   : > { %v1114_v26 = vsel %vm1113_vm7, %v1855_v11, %v1110_v24 }
 0x46d   : > { %v1118_v27 = vmul.f32 %v1114_v26, %v2430_v30  ;;  %v1218_v30 = vld [vmem:[%s2596_s7 + $0x20] sm:$0xff] }
 0x46e   : > { %1250 = vmatpush.msrb.mxu1 %v1218_v30 }
 0x46f   : > { %v1123_v28 = vmul.f32 %v1823_v54, %v1118_v27 }
 0x470   : > { %1251 = vmatpush.msrb.mxu1 %v1217_v32 }
 0x471   : > { %v2469_v29 = vadd.f32 %v1824_v59, %v1123_v28 }
 0x472   : > { %1252 = vmatpush.msrb.mxu1 %v1216_v33 }
 0x473   : > { %1702 = vmatmul.msk.f32.gmra.mxu0 %vm606_vm0, %v2469_v29 }
 0x474   : > { %1253 = vmatpush.msrb.mxu1 %v1215_v34 }
 0x476   : > { %1254 = vmatpush.msrb.mxu1 %v1214_v35 }
 0x4d8   : > { %v1166_v37 = vpop.f32.mrf.mxu0 }
 0x4d9   : > { %v1167_v38 = vadd.f32 %v1825_v36, %v1166_v37 }
 0x4db   : > { %v1182_v39 = vmul.f32 0.044715, %v1167_v38  ;;  %v1178_v55 = vmul.f32 0.5, %v1167_v38 }
 0x4dd   : > { %v1186_v40 = vmul.f32 %v1182_v39, %v1167_v38 }
 0x4df   : > { %v1190_v41 = vmul.f32 %v1186_v40, %v1167_v38 }
 0x4e0   : > { %v1169_v42 = vpop.f32.mrf.mxu0 }
 0x4e1   : > { %v1170_v43 = vadd.f32 %v1825_v36, %v1169_v42  ;;  %v1194_v44 = vadd.f32 %v1190_v41, %v1167_v38 }
 0x4e3   : > { %v1183_v45 = vmul.f32 0.044715, %v1170_v43  ;;  %v1198_v46 = vmul.f32 0.7978846, %v1194_v44  ;;  %v1179_v2 = vmul.f32 0.5, %v1170_v43 }
 0x4e5   : > { %1856 = vtanh.f32 %v1198_v46  ;;  %v1187_v47 = vmul.f32 %v1183_v45, %v1170_v43 }
 0x4e7   : > { %v1191_v48 = vmul.f32 %v1187_v47, %v1170_v43 }
 0x4e8   : > { %v1172_v49 = vpop.f32.mrf.mxu0 }
 0x4e9   : > { %v1173_v50 = vadd.f32 %v1825_v36, %v1172_v49  ;;  %v1195_v51 = vadd.f32 %v1191_v48, %v1170_v43 }
 0x4eb   : > { %v1857_v52 = vpop.eup %1856  ;;  %v1184_v53 = vmul.f32 0.044715, %v1173_v50  ;;  %v1199_v54 = vmul.f32 0.7978846, %v1195_v51  ;;  %v1180_v13 = vmul.f32 0.5, %v1173_v50 }
 0x4ec   : > { %v1206_v56 = vadd.f32 1.0, %v1857_v52 }
 0x4ed   : > { %1858 = vtanh.f32 %v1199_v54  ;;  %v1188_v57 = vmul.f32 %v1184_v53, %v1173_v50 }
 0x4ee   : > { %v1210_v58 = vmul.f32 %v1206_v56, %v1178_v55 }
 0x4ef   : > { %v1192_v59 = vmul.f32 %v1188_v57, %v1173_v50 }
 0x4f0   : > { %v1175_v60 = vpop.f32.mrf.mxu0  ;;  %1703 = vmatmul.msk.f32.vlgmr.msrb.gmra.mxu1 %vm1226_vm8, %v1210_v58 }
 0x4f1   : > { %v1176_v61 = vadd.f32 %v1825_v36, %v1175_v60  ;;  %v1196_v62 = vadd.f32 %v1192_v59, %v1173_v50 }
 0x4f3   : > { %v1859_v63 = vpop.eup %1858  ;;  %v1185_v0 = vmul.f32 0.044715, %v1176_v61  ;;  %v1200_v1 = vmul.f32 0.7978846, %v1196_v62  ;;  %v1181_v12 = vmul.f32 0.5, %v1176_v61 }
 0x4f4   : > { %v1207_v9 = vadd.f32 1.0, %v1859_v63 }
 0x4f5   : > { %1860 = vtanh.f32 %v1200_v1  ;;  %v1189_v4 = vmul.f32 %v1185_v0, %v1176_v61 }
 0x4f6   : > { %v1211_v5 = vmul.f32 %v1207_v9, %v1179_v2 }
 0x4f7   : > { %v1193_v10 = vmul.f32 %v1189_v4, %v1176_v61 }
 0x4f8   : > { %1704 = vmatmul.msk.f32.gmra.mxu1 %vm1226_vm8, %v1211_v5 }
 0x4f9   : > { %v1197_v6 = vadd.f32 %v1193_v10, %v1176_v61  ;;  %v1827_v10 = vld [vmem:[#allocation12] ss:$0 sm:$0xff] }
 0x4fb   : > { %v1861_v7 = vpop.eup %1860  ;;  %v1201_v8 = vmul.f32 0.7978846, %v1197_v6 }
 0x4fc   : > { %v1208_v11 = vadd.f32 1.0, %v1861_v7 }
 0x4fd   : > { %1862 = vtanh.f32 %v1201_v8  ;;  %v1380_v8 = vld [vmem:[%s2599_s10 + $0x18] sm:$0xff] }
 0x4fe   : > { %v1212_v16 = vmul.f32 %v1208_v11, %v1180_v13  ;;  %v1379_v13 = vld [vmem:[%s2599_s10 + $0x10] sm:$0xff]  ;;  %1400 = vmatpush.msrb.mxu2 %v1380_v8 }
 0x500   : > { %1705 = vmatmul.msk.f32.gmra.mxu1 %vm1226_vm8, %v1212_v16  ;;  %1401 = vmatpush.msrb.mxu2 %v1379_v13 }
 0x503   : > { %v1863_v17 = vpop.eup %1862 }
 0x504   : > { %v1209_v18 = vadd.f32 1.0, %v1863_v17  ;;  %v1828_v17 = vld [vmem:[#allocation12 + $0x1] ss:$0 sm:$0xff] }
 0x506   : > { %v1213_v19 = vmul.f32 %v1209_v18, %v1181_v12  ;;  %v1378_v18 = vld [vmem:[%s2599_s10 + $0x8] sm:$0xff] }
 0x507   : > { %1402 = vmatpush.msrb.mxu2 %v1378_v18 }
 0x508   : > { %1706 = vmatmul.msk.f32.gmra.mxu1 %vm1226_vm8, %v1213_v19 }
 0x56d   : > { %v1256_v20 = vpop.f32.mrf.mxu1 }
 0x56e   : > { %v1257_v22 = vadd.f32 %v1826_v21, %v1256_v20 }
 0x570   : > { %v1268_v24 = vadd.f32 %v1257_v22, %v2454_v3 }
 0x572   : > { %v1274_v26 = vsel %vm606_vm0, %v1268_v24, 0.0 }
 0x573   : > { %1275 = vadd.xlane.f32.xlu1 %v1274_v26 }
 0x575   : > { %v1259_v27 = vpop.f32.mrf.mxu1 }
 0x576   : > { %v1260_v28 = vadd.f32 %v1826_v21, %v1259_v27 }
 0x578   : > { %v1269_v25 = vadd.f32 %v1260_v28, %v2459_v15 }
 0x57a   : > { %v1277_v31 = vsel %vm606_vm0, %v1269_v25, 0.0 }
 0x57b   : > { %1278 = vadd.xlane.f32.xlu2 %v1277_v31 }
 0x57d   : > { %v1262_v30 = vpop.f32.mrf.mxu1 }
 0x57e   : > { %v1263_v32 = vadd.f32 %v1826_v21, %v1262_v30 }
 0x580   : > { %v1270_v33 = vadd.f32 %v1263_v32, %v2464_v23 }
 0x582   : > { %v1280_v34 = vsel %vm606_vm0, %v1270_v33, 0.0 }
 0x583   : > { %1281 = vadd.xlane.f32.xlu0 %v1280_v34 }
 0x585   : > { %v1265_v35 = vpop.f32.mrf.mxu1 }
 0x586   : > { %v1266_v36 = vadd.f32 %v1826_v21, %v1265_v35 }
 0x588   : > { %v1271_v3 = vadd.f32 %v1266_v36, %v2469_v29 }
 0x58a   : > { %v1283_v37 = vsel %vm606_vm0, %v1271_v3, 0.0 }
 0x58b   : > { %1284 = vadd.xlane.f32.xlu1 %v1283_v37 }
 0x5e6   : > { %v1276_v38 = vpop.xlane.xlu1 %1275 }
 0x5e7   : > { %v1286_v15 = vmul.f32 %v1276_v38, %v2413_v14 }
 0x5e9   : > { %v1290_v39 = vsub.f32 %v1268_v24, %v1286_v15  ;;  %v1377_v24 = vld [vmem:[%s2599_s10] sm:$0xff] }
 0x5ea   : > { %1403 = vmatpush.msrb.mxu2 %v1377_v24  ;;  %v1455_v24 = vld [vmem:[#allocation13] sm:$0xff] }
 0x5eb   : > { %v1294_v40 = vmul.f32 %v1290_v39, %v1290_v39 }
 0x5ed   : > { %v1298_v41 = vsel %vm606_vm0, %v1294_v40, 0.0 }
 0x5ee   : > { %v1279_v42 = vpop.xlane.xlu2 %1278  ;;  %1299 = vadd.xlane.f32.xlu2 %v1298_v41 }
 0x5ef   : > { %v1287_v23 = vmul.f32 %v1279_v42, %v2413_v14 }
 0x5f1   : > { %v2512_v43 = vsub.f32 %v1269_v25, %v1287_v23 }
 0x5f3   : > { %v1295_v44 = vmul.f32 %v2512_v43, %v2512_v43 }
 0x5f5   : > { %v1301_v29 = vsel %vm606_vm0, %v1295_v44, 0.0 }
 0x5f6   : > { %v1282_v45 = vpop.xlane.xlu0 %1281  ;;  %1302 = vadd.xlane.f32.xlu0 %v1301_v29 }
 0x5f7   : > { %v1288_v46 = vmul.f32 %v1282_v45, %v2413_v14 }
 0x5f9   : > { %v2518_v47 = vsub.f32 %v1270_v33, %v1288_v46 }
 0x5fb   : > { %v1296_v48 = vmul.f32 %v2518_v47, %v2518_v47 }
 0x5fd   : > { %v1304_v49 = vsel %vm606_vm0, %v1296_v48, 0.0 }
 0x5fe   : > { %1305 = vadd.xlane.f32.xlu1 %v1304_v49  ;;  %v1285_v50 = vpop.xlane.xlu1 %1284 }
 0x5ff   : > { %v1289_v51 = vmul.f32 %v1285_v50, %v2413_v14 }
 0x601   : > { %v2524_v52 = vsub.f32 %v1271_v3, %v1289_v51 }
 0x603   : > { %v1297_v53 = vmul.f32 %v2524_v52, %v2524_v52 }
 0x605   : > { %v1307_v54 = vsel %vm606_vm0, %v1297_v53, 0.0 }
 0x606   : > { %1308 = vadd.xlane.f32.xlu2 %v1307_v54 }
 0x661   : > { %v1300_v55 = vpop.xlane.xlu2 %1299 }
 0x662   : > { %v1310_v56 = vmul.f32 %v1300_v55, %v2413_v14 }
 0x664   : > { %v1314_v57 = vadd.f32 1e-05, %v1310_v56 }
 0x666   : > { %1864 = vrsqrt.f32 %v1314_v57  ;;  %vm1324_vm10 = vweird.f32 %v1314_v57 }
 0x669   : > { %v1303_v58 = vpop.xlane.xlu0 %1302 }
 0x66a   : > { %v1311_v59 = vmul.f32 %v1303_v58, %v2413_v14 }
 0x66c   : > { %v1865_v60 = vpop.eup %1864  ;;  %v1315_v61 = vadd.f32 1e-05, %v1311_v59 }
 0x66d   : > { %v1319_v62 = vmul.f32 %v1865_v60, %v1314_v57  ;;  %vm1325_vm9 = vweird.f32 %v1865_v60 }
 0x66e   : > { %1866 = vrsqrt.f32 %v1315_v61  ;;  %vm1326_vm11 = vmor %vm1324_vm10, %vm1325_vm9  ;;  %vm1334_vm13 = vweird.f32 %v1315_v61 }
 0x66f   : > { %v1320_v63 = vmul.f32 %v1865_v60, %v1319_v62 }
 0x671   : > { %v1321_v0 = vmul.f32 0.5, %v1320_v63  ;;  %v1306_v1 = vpop.xlane.xlu1 %1305 }
 0x672   : > { %v1312_v2 = vmul.f32 %v1306_v1, %v2413_v14 }
 0x673   : > { %v1322_v9 = vsub.f32 1.5, %v1321_v0 }
 0x674   : > { %v1867_v4 = vpop.eup %1866  ;;  %v1316_v5 = vadd.f32 1e-05, %v1312_v2 }
 0x675   : > { %v1323_v6 = vmul.f32 %v1865_v60, %v1322_v9  ;;  %v1329_v7 = vmul.f32 %v1867_v4, %v1315_v61  ;;  %vm1335_vm12 = vweird.f32 %v1867_v4 }
 0x676   : > { %1868 = vrsqrt.f32 %v1316_v5  ;;  %vm1336_vm14 = vmor %vm1334_vm13, %vm1335_vm12  ;;  %vm1344_vm1 = vweird.f32 %v1316_v5 }
 0x677   : > { %v1327_v11 = vsel %vm1326_vm11, %v1865_v60, %v1323_v6  ;;  %v1330_v16 = vmul.f32 %v1867_v4, %v1329_v7  ;;  %vm1447_vm11 = vcmask 257024  }
 0x678   : > { %v1358_v12 = vmul.f32 %v1327_v11, %v1290_v39 }
 0x679   : > { %v1331_v19 = vmul.f32 0.5, %v1330_v16  ;;  %v1309_v21 = vpop.xlane.xlu2 %1308 }
 0x67a   : > { %v1363_v20 = vmul.f32 %v1827_v10, %v1358_v12  ;;  %v1313_v22 = vmul.f32 %v1309_v21, %v2413_v14  ;;  %v1458_v21 = vld [vmem:[#allocation13 + $0x18] sm:$0xff] }
 0x67b   : > { %v1332_v26 = vsub.f32 1.5, %v1331_v19  ;;  %1475 = vmatpush.msra.mxu2 %v1458_v21 }
 0x67c   : > { %v1869_v27 = vpop.eup %1868  ;;  %v1368_v28 = vadd.f32 %v1828_v17, %v1363_v20  ;;  %v1317_v25 = vadd.f32 1e-05, %v1313_v22  ;;  %v1457_v20 = vld [vmem:[#allocation13 + $0x10] sm:$0xff]  ;;  %v1456_v22 = vld [vmem:[#allocation13 + $0x8] sm:$0xff] }
 0x67d   : > { %v1333_v31 = vmul.f32 %v1867_v4, %v1332_v26  ;;  %v1339_v30 = vmul.f32 %v1869_v27, %v1316_v5  ;;  %vm1345_vm15 = vweird.f32 %v1869_v27  ;;  %1476 = vmatpush.msra.mxu2 %v1457_v20 }
 0x67e   : > { %1372 = vst.msk [vmem:[#allocation2] sm:$0xff] %vm606_vm0, %v1368_v28  ;;  %1870 = vrsqrt.f32 %v1317_v25  ;;  %vm1346_vm2 = vmor %vm1344_vm1, %vm1345_vm15  ;;  %vm1354_vm4 = vweird.f32 %v1317_v25 }
 0x67f   : > { %v1337_v32 = vsel %vm1336_vm14, %v1867_v4, %v1333_v31  ;;  %v1340_v14 = vmul.f32 %v1869_v27, %v1339_v30  ;;  %1477 = vmatpush.msra.mxu2 %v1456_v22 }
 0x680   : > { %v1359_v33 = vmul.f32 %v1337_v32, %v2512_v43 }
 0x681   : > { %v1341_v34 = vmul.f32 0.5, %v1340_v14  ;;  %1478 = vmatpush.msra.mxu2 %v1455_v24 }
 0x682   : > { %v1364_v35 = vmul.f32 %v1827_v10, %v1359_v33 }
 0x683   : > { %v1342_v36 = vsub.f32 1.5, %v1341_v34  ;;  %v1459_v34 = vld [vmem:[%s2602_s13] sm:$0x1] }
 0x684   : > { %v1871_v3 = vpop.eup %1870  ;;  %v1369_v37 = vadd.f32 %v1828_v17, %v1364_v35 }
 0x685   : > { %v1343_v38 = vmul.f32 %v1869_v27, %v1342_v36  ;;  %v1349_v15 = vmul.f32 %v1871_v3, %v1317_v25  ;;  %vm1355_vm3 = vweird.f32 %v1871_v3 }
 0x686   : > { %1373 = vst.msk [vmem:[#allocation2 + $0x8] sm:$0xff] %vm606_vm0, %v1369_v37  ;;  %vm1356_vm5 = vmor %vm1354_vm4, %vm1355_vm3 }
 0x687   : > { %v1347_v39 = vsel %vm1346_vm2, %v1869_v27, %v1343_v38  ;;  %v1350_v40 = vmul.f32 %v1871_v3, %v1349_v15 }
 0x688   : > { %v1360_v41 = vmul.f32 %v1347_v39, %v2518_v47  ;;  %v1829_v47 = vld [vmem:[#allocation3] ss:$0 sm:$0xff] }
 0x689   : > { %v1351_v42 = vmul.f32 0.5, %v1350_v40 }
 0x68a   : > { %v1365_v23 = vmul.f32 %v1827_v10, %v1360_v41 }
 0x68b   : > { %v1352_v44 = vsub.f32 1.5, %v1351_v42 }
 0x68c   : > { %v1370_v43 = vadd.f32 %v1828_v17, %v1365_v23 }
 0x68d   : > { %v1353_v29 = vmul.f32 %v1871_v3, %v1352_v44 }
 0x68e   : > { %1374 = vst.msk [vmem:[#allocation2 + $0x10] sm:$0xff] %vm606_vm0, %v1370_v43 }
 0x68f   : > { %v1357_v45 = vsel %vm1356_vm5, %v1871_v3, %v1353_v29 }
 0x690   : > { %v1361_v46 = vmul.f32 %v1357_v45, %v2524_v52 }
 0x692   : > { %v1366_v48 = vmul.f32 %v1827_v10, %v1361_v46 }
 0x694   : > { %v1371_v49 = vadd.f32 %v1828_v17, %v1366_v48 }
 0x696   : > { %1375 = vst.msk [vmem:[#allocation2 + $0x18] sm:$0xff] %vm606_vm0, %v1371_v49 }
 0x69d   : > { %v1376_v50 = vld [vmem:[#allocation2] ss:$8 sm:$0xf] }
 0x69e   : > { %1707 = vmatmul.msk.f32.vlgmr.msrb.gmra.mxu2 %vm606_vm0, %v1376_v50 }
 0x721   : > { %v1405_v51 = vpop.f32.mrf.mxu2 }
 0x722   : > { %v1406_v53 = vadd.f32 %v1829_v47, %v1405_v51 }
 0x724   : > { %v1409_v54 = vsel %vm1408_vm6, %v1406_v53, -inf }
 0x725   : > { %v1410_v55 = vrot.slane %v1409_v54, 4 }
 0x727   : > { %v1411_v56 = vmax.f32 %v1409_v54, %v1410_v55 }
 0x729   : > { %v1412_v57 = vrot.slane %v1411_v56, 2 }
 0x72b   : > { %v1413_v58 = vmax.f32 %v1411_v56, %v1412_v57 }
 0x72d   : > { %v1414_v59 = vrot.slane %v1413_v58, 1 }
 0x72f   : > { %v1415_v60 = vmax.f32 %v1413_v58, %v1414_v59 }
 0x731   : > { %v1416_v61 = vsub.f32 %v1406_v53, %v1415_v60 }
 0x733   : > { %v1417_v52 = vmul.f32 1.442695, %v1416_v61 }
 0x735   : > { %1872 = vpow2.f32 %v1417_v52 }
 0x73b   : > { %v1873_v62 = vpop.eup %1872 }
 0x73c   : > { %v1419_v63 = vsel %vm1408_vm6, %v1873_v62, 0.0 }
 0x73d   : > { %v1420_v0 = vrot.slane %v1419_v63, 4 }
 0x73f   : > { %v1421_v1 = vadd.f32 %v1420_v0, %v1419_v63 }
 0x741   : > { %v1422_v2 = vrot.slane %v1421_v1, 2 }
 0x743   : > { %v1423_v9 = vadd.f32 %v1422_v2, %v1421_v1 }
 0x745   : > { %v1424_v4 = vrot.slane %v1423_v9, 1 }
 0x747   : > { %v1425_v5 = vadd.f32 %v1424_v4, %v1423_v9 }
 0x749   : > { %1874 = vrcp.f32 %v1425_v5  ;;  %v1437_v8 = vand.u32 2147483648, %v1425_v5  ;;  %v1435_v11 = vand.u32 2147483647, %v1425_v5  ;;  %vm1431_vm8 = vweird.f32 %v1425_v5 }
 0x74b   : > { %v1438_v17 = vor.u32 1.1754944e-38, %v1437_v8  ;;  %vm1436_vm10 = vcmp.eq.f32.partialorder %v1435_v11, 8.507059e+37 }
 0x74f   : > { %v1875_v10 = vpop.eup %1874 }
 0x750   : > { %v1427_v6 = vmul.f32 %v1875_v10, %v1425_v5  ;;  %vm1432_vm7 = vweird.f32 %v1875_v10 }
 0x751   : > { %vm1433_vm9 = vmor %vm1431_vm8, %vm1432_vm7 }
 0x752   : > { %v1428_v7 = vsub.f32 1.0, %v1427_v6 }
 0x754   : > { %v1429_v13 = vmul.f32 %v1875_v10, %v1428_v7 }
 0x756   : > { %v1430_v16 = vadd.f32 %v1875_v10, %v1429_v13 }
 0x758   : > { %v1434_v12 = vsel %vm1433_vm9, %v1875_v10, %v1430_v16 }
 0x759   : > { %v1439_v18 = vsel %vm1436_vm10, %v1438_v17, %v1434_v12 }
 0x75a   : > { %v1440_v19 = vmul.f32 %v1873_v62, %v1439_v18 }
 0x75c   : > { %1443 = vperm.xlu0 %1818, %v1440_v19  }
 0x7ce   : > { %v1444_v26 = vpop.permute.xlu0 %1443 }
 0x7cf   : > { %v1446_v27 = vmul.f32 %v1444_v26, %v1376_v50 }
 0x7d1   : > { %v1448_v28 = vsel %vm1447_vm11, %v1446_v27, 0.0 }
 0x7d2   : > { %v1449_v25 = vrot.slane %v1448_v28, 4 }
 0x7d4   : > { %v1450_v31 = vadd.f32 %v1449_v25, %v1448_v28 }
 0x7d6   : > { %v1451_v30 = vrot.slane %v1450_v31, 2 }
 0x7d8   : > { %v1452_v32 = vadd.f32 %v1451_v30, %v1450_v31 }
 0x7da   : > { %v1453_v14 = vrot.slane %v1452_v32, 1 }
 0x7dc   : > { %v1454_v33 = vadd.f32 %v1453_v14, %v1452_v32 }
 0x7de   : > { %1708 = vmatmul.msk.f32.vlgmr.msra.gmra.mxu2 %vm606_vm0, %v1454_v33 }
 0x861   : > { %v1480_v35 = vpop.f32.mrf.mxu2 }
 0x862   : > { %v1481_v36 = vadd.f32 %v1480_v35, %v1459_v34 }
 0x864   : > { %v1483_v3 = vsub.f32 0.0, %v1481_v36 }
 0x866   : > { %v1484_v37 = vmul.f32 1.442695, %v1483_v3 }
 0x868   : > { %1876 = vpow2.f32 %v1484_v37 }
 0x86e   : > { %v1877_v38 = vpop.eup %1876 }
 0x86f   : > { %v1486_v15 = vadd.f32 1.0, %v1877_v38 }
 0x871   : > { %1878 = vrcp.f32 %v1486_v15  ;;  %v1498_v42 = vand.u32 2147483648, %v1486_v15  ;;  %v1496_v44 = vand.u32 2147483647, %v1486_v15  ;;  %vm1492_vm12 = vweird.f32 %v1486_v15 }
 0x873   : > { %v1499_v29 = vor.u32 1.1754944e-38, %v1498_v42  ;;  %vm1497_vm14 = vcmp.eq.f32.partialorder %v1496_v44, 8.507059e+37 }
 0x877   : > { %v1879_v39 = vpop.eup %1878 }
 0x878   : > { %v1488_v40 = vmul.f32 %v1879_v39, %v1486_v15  ;;  %vm1493_vm0 = vweird.f32 %v1879_v39 }
 0x879   : > { %vm1494_vm13 = vmor %vm1492_vm12, %vm1493_vm0 }
 0x87a   : > { %v1489_v41 = vsub.f32 1.0, %v1488_v40 }
 0x87c   : > { %v1490_v23 = vmul.f32 %v1879_v39, %v1489_v41 }
 0x87e   : > { %v1491_v43 = vadd.f32 %v1879_v39, %v1490_v23 }
 0x880   : > { %v1495_v45 = vsel %vm1494_vm13, %v1879_v39, %v1491_v43 }
 0x881   : > { %v1500_v46 = vsel %vm1497_vm14, %v1499_v29, %v1495_v45 }
 0x882   : > { %v1502_v48 = vperm.slane %v1500_v46, 0 }
 0x884   : > { %1503 = vst [vmem:[%s567_s2] sm:$0xff] %v1502_v48 }
 0x885   : > { %2087 = shalt.err (!%p2084_p8)
}
 0x886   : > { %1738 = dma.vmem_to_hbm [thread:$0]  (%p2266_p5), %s1518_s15, 128, %s1520_s17, %s1505_s11  }
 0x887 PF: > { %s2626_s23 = sld [smem:[#allocation23_spill]] }
 0x888   : > { %s2627_s30 = sld [smem:[#allocation21_spill]] }
 0x88d   : > { %p1775_p9 = scmp.ge.s32.totalorder %s2626_s23, 2 }
 0x88e   : > { %s1531_s25 = sand.u32 1, %s2627_s30  }
 0x88f   : > { %p1760_p10 = pnand %p1775_p9, %p2270_p6  ;;  %s1532_s21 = scalar_lea.sflag [#allocation6], %s1531_s25 }
 0x891   : > { %p1761_p11 = pneg %p1760_p10 }
 0x893   : > { %2121 = dma.done.wait (%p1761_p11), %s1532_s21, 128  }
 0x894   : > { %2123 = vsyncadd (%p1761_p11), %s1532_s21, 4294967168  ;;  %s2629_s18 = sld [smem:[#allocation24_spill]]  ;;  %s2632_s15 = smov %s2130_s16 }
 0x895   : > { %s2630_s3 = sld [smem:[#allocation22_spill]] }
 0x896   : > { %s2631_s17 = sld [smem:[#allocation25_spill]] }
 0x89a   : > { %p30_p12 = scmp.ge.s32.totalorder %s2629_s18, 4  }
 0x89b   : > { %s2633_s16 = smov %s2630_s3 }
 0x89c   :  { %32 = sbr.rel (!%p30_p12) target bundleno = 11 (0xb), region = 142 }
 0x8a1   :  { %1538 = vsyncpa [#allocation5], 1 }
 0x8a2   :  { %1540 = vsyncpa [#allocation5 + $0x1], 1 }
 0x8a3   :  { %1541 = vsyncpa [#allocation8], 1 }
 0x8a4   :  { %1542 = vsyncpa [#allocation11], 1 }
 0x8a5   :  { %1543 = vsyncpa [#allocation14], 1 }
 0x8a6   :  { %1544 = vsyncpa [#allocation6], 1 }
 0x8a7   :  { %1546 = vsyncpa [#allocation6 + $0x1], 1 }

</bundles_post_ra>
